<compile_context>
chip_gen: v5e
topology: v5e:2x2
jax: 0.10.0
libtpu: 0.0.40
codegen_flags: <defaults>
</compile_context>

<pallas_src>
import functools

import jax
import jax.numpy as jnp
from jax.experimental import pallas as pl
from jax.experimental.pallas import tpu as pltpu

_BN_EPS = 1e-5


# ---------------------------------------------------------------------------
# Fused Pallas kernel: conv1+bn1+relu6 -> conv2+bn2 -> +identity -> relu6
# ---------------------------------------------------------------------------
def _basic_block_kernel(x_ref, w1_ref, b1_ref, w2_ref, b2_ref, mask_ref,
                        out_ref, pad_ref, patches_ref, *,
                        B_blk, C, H, W, PAD, compute_dtype):
    """Fused BasicBlock for B_blk samples.

    x_ref      : (B_blk, C, H*W) f32       flattened NCHW input (lane axis = H*W)
    w1_ref     : (C, 9*C) compute_dtype    conv1 weights, bn1 scale folded in
    b1_ref     : (C, 1)   f32              bn1 bias (beta - mean*scale)
    w2_ref     : (C, 9*C) compute_dtype    conv2 weights, bn2 scale folded in
    b2_ref     : (C, 1)   f32              bn2 bias
    mask_ref   : (2, H*W) compute_dtype    row 0: valid for dx=-1, row 1: dx=+1
    out_ref    : (B_blk, C, H*W) f32
    pad_ref    : (C, H*W + 2*PAD) compute_dtype VMEM scratch (padded flat act)
    patches_ref: (9*C, H*W)       compute_dtype VMEM scratch (im2col patches)
    """
    HW = H * W

    # Zero ONLY the two halo strips; the interior is fully overwritten by the
    # copy at the start of every conv.  Re-done each grid step (cheap: 2*C*PAD
    # elements) so correctness does not depend on which core ran step 0.
    pad_ref[:, :PAD] = jnp.zeros((C, PAD), pad_ref.dtype)
    pad_ref[:, PAD + HW:PAD + HW + PAD] = jnp.zeros((C, PAD), pad_ref.dtype)

    m_left = mask_ref[0:1, :]            # (1, HW) hoisted mask loads
    m_right = mask_ref[1:2, :]

    def conv3x3(act_cd, w_ref):
        # act_cd: (C, HW) in compute_dtype.  PAD is a multiple of 128, so this
        # interior copy is a lane-aligned, unmasked store.
        pad_ref[:, PAD:PAD + HW] = act_cd
        # im2col: each of the 9 taps (dy, dx) is a static lane-slice of the
        # padded flat activation (H boundary handled by the zero halo, W
        # wrap-around by the column masks), written straight into the bf16
        # patches scratch.  One MXU matmul per conv (K = 9*C), f32 accumulate.
        t = 0
        for oy in (-1, 0, 1):
            for ox in (-1, 0, 1):
                start = PAD + oy * W + ox
                piece = pad_ref[:, start:start + HW]          # (C, HW)
                if ox == -1:
                    piece = piece * m_left
                elif ox == 1:
                    piece = piece * m_right
                patches_ref[t * C:(t + 1) * C, :] = piece
                t += 1
        return jnp.dot(w_ref[...], patches_ref[...],
                       preferred_element_type=jnp.float32)

    for b in range(B_blk):               # static per-sample loop in this block
        x = x_ref[b]                      # (C, HW) f32, residual stays f32
        # conv1 + folded bn1 + ReLU6
        y = conv3x3(x.astype(compute_dtype), w1_ref) + b1_ref[...]
        y = jnp.clip(y, 0.0, 6.0)
        # conv2 + folded bn2 + identity + ReLU6
        y = conv3x3(y.astype(compute_dtype), w2_ref) + b2_ref[...]
        out_ref[b] = jnp.clip(y + x, 0.0, 6.0).astype(out_ref.dtype)


# ---------------------------------------------------------------------------
# Wrapper
# ---------------------------------------------------------------------------
def _pick_batch_block(n, cap=8):
    for b in range(min(n, cap), 0, -1):
        if n % b == 0:
            return b
    return 1


def basic_block_forward(x_nchw, params, *, compute_dtype=jnp.bfloat16):
    """BasicBlock.forward (eval mode). Input/output are NCHW f32."""
    N, C, H, W = x_nchw.shape
    HW = H * W
    # BasicBlock defaults assumed: stride=1, downsample=None, groups=1,
    # dilation=1, residual is the raw input => inplanes must equal planes.
    assert params["conv1_w"].shape == (C, C, 3, 3), "requires inplanes == planes, 3x3 kernel"
    assert params["conv2_w"].shape == (C, C, 3, 3)
    # Note: C multiple of 16 keeps the bf16 patches sublane slices tile-aligned.

    # Fold eval-mode BN into per-channel scale/bias (in f32); fold the scale
    # into the conv weights; cast to compute_dtype only at the very end.
    s1 = params["bn1_gamma"] * jax.lax.rsqrt(params["bn1_var"] + _BN_EPS)
    b1 = (params["bn1_beta"] - params["bn1_mean"] * s1).reshape(C, 1).astype(jnp.float32)
    s2 = params["bn2_gamma"] * jax.lax.rsqrt(params["bn2_var"] + _BN_EPS)
    b2 = (params["bn2_beta"] - params["bn2_mean"] * s2).reshape(C, 1).astype(jnp.float32)

    def fold(w_oihw, scale):
        w = w_oihw * scale[:, None, None, None]                      # (Co,Ci,3,3)
        w = jnp.transpose(w, (0, 2, 3, 1)).reshape(w.shape[0], -1)   # (Co, 9*Ci)
        return w.astype(compute_dtype)

    w1 = fold(params["conv1_w"], s1)
    w2 = fold(params["conv2_w"], s2)

    # Column-validity masks for the dx = -1 / +1 taps (W wrap-around).
    col = jnp.arange(HW, dtype=jnp.int32) % W
    masks = jnp.stack([(col != 0), (col != W - 1)]).astype(compute_dtype)  # (2,HW)

    # Free row-major reshape: keep NCHW, flatten spatial dims (lane axis = HW).
    x_flat = x_nchw.reshape(N, C, HW)

    PAD = max(128, ((W + 1 + 127) // 128) * 128)   # 128-lane-aligned halo
    B_blk = _pick_batch_block(N)

    kernel = functools.partial(_basic_block_kernel, B_blk=B_blk, C=C, H=H, W=W,
                               PAD=PAD, compute_dtype=compute_dtype)

    cd_bytes = jnp.dtype(compute_dtype).itemsize
    vmem_est = (
        2 * (B_blk * C * HW * 4) * 2               # x / out blocks, double-buffered
        + 2 * (C * 9 * C * cd_bytes) * 2           # w1, w2
        + (2 * HW * cd_bytes + 2 * C * 4) * 2      # masks, biases
        + C * (HW + 2 * PAD) * cd_bytes            # padded-activation scratch
        + 9 * C * HW * cd_bytes                    # im2col patches scratch
    )
    vmem_limit = int(min(max(2 * vmem_est, 32 << 20), 64 << 20))

    cost = pl.CostEstimate(
        flops=2 * (2 * 9 * C * C * HW * N),        # two 3x3 convs
        transcendentals=0,
        bytes_accessed=(2 * N * C * HW) * 4 + 2 * C * 9 * C * cd_bytes)

    out_flat = pl.pallas_call(
        kernel,
        out_shape=jax.ShapeDtypeStruct((N, C, HW), jnp.float32),
        grid_spec=pltpu.PrefetchScalarGridSpec(
            num_scalar_prefetch=0,
            grid=(N // B_blk,),
            in_specs=[
                pl.BlockSpec((B_blk, C, HW), lambda n: (n, 0, 0)),  # x
                pl.BlockSpec((C, 9 * C), lambda n: (0, 0)),         # w1 (folded)
                pl.BlockSpec((C, 1), lambda n: (0, 0)),             # b1
                pl.BlockSpec((C, 9 * C), lambda n: (0, 0)),         # w2 (folded)
                pl.BlockSpec((C, 1), lambda n: (0, 0)),             # b2
                pl.BlockSpec((2, HW), lambda n: (0, 0)),            # masks
            ],
            out_specs=pl.BlockSpec((B_blk, C, HW), lambda n: (n, 0, 0)),
            scratch_shapes=[
                pltpu.VMEM((C, HW + 2 * PAD), compute_dtype),   # padded flat act
                pltpu.VMEM((9 * C, HW), compute_dtype),         # im2col patches
            ],
        ),
        compiler_params=pltpu.CompilerParams(
            dimension_semantics=("parallel",),
            vmem_limit_bytes=vmem_limit),
        cost_estimate=cost,
    )(x_flat, w1, b1, w2, b2, masks)

    return out_flat.reshape(N, C, H, W)


# ---------------------------------------------------------------------------
# Pure-JAX reference (mirrors the PyTorch NCHW semantics, eval-mode BN)
# ---------------------------------------------------------------------------
def _reference_forward(x_nchw, params):
    def conv(x, w):
        return jax.lax.conv_general_dilated(
            x, w, window_strides=(1, 1), padding=((1, 1), (1, 1)),
            dimension_numbers=("NCHW", "OIHW", "NCHW"))

    def bn(x, g, b, m, v):
        g = g[None, :, None, None]; b = b[None, :, None, None]
        m = m[None, :, None, None]; v = v[None, :, None, None]
        return g * (x - m) / jnp.sqrt(v + _BN_EPS) + b

    relu6 = lambda t: jnp.clip(t, 0.0, 6.0)

    out = conv(x_nchw, params["conv1_w"])
    out = relu6(bn(out, params["bn1_gamma"], params["bn1_beta"],
                   params["bn1_mean"], params["bn1_var"]))
    out = conv(out, params["conv2_w"])
    out = bn(out, params["bn2_gamma"], params["bn2_beta"],
             params["bn2_mean"], params["bn2_var"])
    return relu6(out + x_nchw)


# ---------------------------------------------------------------------------
def _init_params(key, inplanes, planes):
    ks = jax.random.split(key, 6)
    return {
        "conv1_w": 0.1 * jax.random.normal(ks[0], (planes, inplanes, 3, 3), jnp.float32),
        "conv2_w": 0.1 * jax.random.normal(ks[1], (planes, planes, 3, 3), jnp.float32),
        "bn1_gamma": 1.0 + 0.1 * jax.random.normal(ks[2], (planes,), jnp.float32),
        "bn1_beta": 0.1 * jax.random.normal(ks[3], (planes,), jnp.float32),
        "bn1_mean": jnp.zeros((planes,), jnp.float32),
        "bn1_var": jnp.ones((planes,), jnp.float32),
        "bn2_gamma": 1.0 + 0.1 * jax.random.normal(ks[4], (planes,), jnp.float32),
        "bn2_beta": 0.1 * jax.random.normal(ks[5], (planes,), jnp.float32),
        "bn2_mean": jnp.zeros((planes,), jnp.float32),
        "bn2_var": jnp.ones((planes,), jnp.float32),
    }


if __name__ == "__main__":
    N, C, H, W = 2, 16, 16, 16         # inplanes == planes (no downsample, stride=1)
    key = jax.random.PRNGKey(0)
    kx, kp = jax.random.split(key)
    x = jax.random.normal(kx, (N, C, H, W), jnp.float32)
    params = _init_params(kp, C, C)

    ref = jax.block_until_ready(_reference_forward(x, params))

    # Strict-precision path (f32 MXU operands) -- numerics check only.
    out_f32 = jax.block_until_ready(
        basic_block_forward(x, params, compute_dtype=jnp.float32))
    assert out_f32.shape == (N, C, H, W)
    assert jnp.allclose(out_f32, ref, atol=5e-4, rtol=5e-4), \
        float(jnp.max(jnp.abs(out_f32 - ref)))

    # Default fast path: bf16 MXU operands, f32 accumulate (all generations).
    out_bf16 = jax.block_until_ready(
        basic_block_forward(x, params, compute_dtype=jnp.bfloat16))
    assert out_bf16.shape == (N, C, H, W)
    assert jnp.allclose(out_bf16, ref, atol=5e-2, rtol=5e-2), \
        float(jnp.max(jnp.abs(out_bf16 - ref)))

    print("KERNEL_OK")
</pallas_src>

<mosaic_0001>
module attributes {stable_mosaic.version = 11 : i64} {
  func.func @_basic_block_kernel(%arg0: i32, %arg1: memref<2x16x256xf32, #tpu.memory_space<vmem>>, %arg2: memref<16x144xf32, #tpu.memory_space<vmem>>, %arg3: memref<16x1xf32, #tpu.memory_space<vmem>>, %arg4: memref<16x144xf32, #tpu.memory_space<vmem>>, %arg5: memref<16x1xf32, #tpu.memory_space<vmem>>, %arg6: memref<2x256xf32, #tpu.memory_space<vmem>>, %arg7: memref<2x16x256xf32, #tpu.memory_space<vmem>>, %arg8: memref<16x512xf32, #tpu.memory_space<vmem>>, %arg9: memref<144x256xf32, #tpu.memory_space<vmem>>) attributes {dimension_semantics = [#tpu.dimension_semantics<parallel>], iteration_bounds = array<i64: 1>, scalar_prefetch = 0 : i64, scratch_operands = 2 : i64, tpu.core_type = #tpu.core_type<tc>, window_params = [{transform_indices = @transform_0, window_bounds = array<i64: 2, 16, 256>}, {pipeline_mode = #tpu.pipeline_mode<synchronous>, transform_indices = @transform_1, window_bounds = array<i64: 16, 144>}, {pipeline_mode = #tpu.pipeline_mode<synchronous>, transform_indices = @transform_2, window_bounds = array<i64: 16, 1>}, {pipeline_mode = #tpu.pipeline_mode<synchronous>, transform_indices = @transform_3, window_bounds = array<i64: 16, 144>}, {pipeline_mode = #tpu.pipeline_mode<synchronous>, transform_indices = @transform_4, window_bounds = array<i64: 16, 1>}, {pipeline_mode = #tpu.pipeline_mode<synchronous>, transform_indices = @transform_5, window_bounds = array<i64: 2, 256>}, {transform_indices = @transform_6, window_bounds = array<i64: 2, 16, 256>}]} {
    %cst = arith.constant 0.000000e+00 : f32
    %0 = vector.broadcast %cst : f32 to vector<16x128xf32>
    %c0 = arith.constant 0 : index
    %c0_0 = arith.constant 0 : index
    %1 = vector.load %arg8[%c0, %c0_0] : memref<16x512xf32, #tpu.memory_space<vmem>>, vector<16x128xf32>
    tpu.vector_store %arg8[%c0, %c0_0], %0 {strides = array<i32>} : memref<16x512xf32, #tpu.memory_space<vmem>>, vector<16x128xf32>,
    %cst_1 = arith.constant 0.000000e+00 : f32
    %2 = vector.broadcast %cst_1 : f32 to vector<16x128xf32>
    %c0_2 = arith.constant 0 : index
    %c384 = arith.constant 384 : index
    %3 = vector.load %arg8[%c0_2, %c384] : memref<16x512xf32, #tpu.memory_space<vmem>>, vector<16x128xf32>
    tpu.vector_store %arg8[%c0_2, %c384], %2 {strides = array<i32>} : memref<16x512xf32, #tpu.memory_space<vmem>>, vector<16x128xf32>,
    %c0_3 = arith.constant 0 : index
    %c0_4 = arith.constant 0 : index
    %4 = vector.load %arg6[%c0_3, %c0_4] : memref<2x256xf32, #tpu.memory_space<vmem>>, vector<1x256xf32>
    %c1 = arith.constant 1 : index
    %c0_5 = arith.constant 0 : index
    %5 = vector.load %arg6[%c1, %c0_5] : memref<2x256xf32, #tpu.memory_space<vmem>>, vector<1x256xf32>
    %c0_6 = arith.constant 0 : index
    %c0_7 = arith.constant 0 : index
    %c0_8 = arith.constant 0 : index
    %6 = vector.load %arg1[%c0_6, %c0_7, %c0_8] : memref<2x16x256xf32, #tpu.memory_space<vmem>>, vector<1x16x256xf32>
    %7 = vector.shape_cast %6 : vector<1x16x256xf32> to vector<16x256xf32>
    %c0_9 = arith.constant 0 : index
    %c128 = arith.constant 128 : index
    %8 = vector.load %arg8[%c0_9, %c128] : memref<16x512xf32, #tpu.memory_space<vmem>>, vector<16x256xf32>
    tpu.vector_store %arg8[%c0_9, %c128], %7 {strides = array<i32>} : memref<16x512xf32, #tpu.memory_space<vmem>>, vector<16x256xf32>,
    %c0_10 = arith.constant 0 : index
    %c111 = arith.constant 111 : index
    %9 = vector.load %arg8[%c0_10, %c111] : memref<16x512xf32, #tpu.memory_space<vmem>>, vector<16x256xf32>
    %10 = vector.broadcast %4 : vector<1x256xf32> to vector<16x256xf32>
    %11 = arith.mulf %9, %10 : vector<16x256xf32>
    %c0_11 = arith.constant 0 : index
    %c0_12 = arith.constant 0 : index
    %12 = vector.load %arg9[%c0_11, %c0_12] : memref<144x256xf32, #tpu.memory_space<vmem>>, vector<16x256xf32>
    tpu.vector_store %arg9[%c0_11, %c0_12], %11 {strides = array<i32>} : memref<144x256xf32, #tpu.memory_space<vmem>>, vector<16x256xf32>,
    %c0_13 = arith.constant 0 : index
    %c112 = arith.constant 112 : index
    %13 = vector.load %arg8[%c0_13, %c112] : memref<16x512xf32, #tpu.memory_space<vmem>>, vector<16x256xf32>
    %c16 = arith.constant 16 : index
    %c0_14 = arith.constant 0 : index
    %14 = vector.load %arg9[%c16, %c0_14] : memref<144x256xf32, #tpu.memory_space<vmem>>, vector<16x256xf32>
    tpu.vector_store %arg9[%c16, %c0_14], %13 {strides = array<i32>} : memref<144x256xf32, #tpu.memory_space<vmem>>, vector<16x256xf32>,
    %c0_15 = arith.constant 0 : index
    %c113 = arith.constant 113 : index
    %15 = vector.load %arg8[%c0_15, %c113] : memref<16x512xf32, #tpu.memory_space<vmem>>, vector<16x256xf32>
    %16 = vector.broadcast %5 : vector<1x256xf32> to vector<16x256xf32>
    %17 = arith.mulf %15, %16 : vector<16x256xf32>
    %c32 = arith.constant 32 : index
    %c0_16 = arith.constant 0 : index
    %18 = vector.load %arg9[%c32, %c0_16] : memref<144x256xf32, #tpu.memory_space<vmem>>, vector<16x256xf32>
    tpu.vector_store %arg9[%c32, %c0_16], %17 {strides = array<i32>} : memref<144x256xf32, #tpu.memory_space<vmem>>, vector<16x256xf32>,
    %c0_17 = arith.constant 0 : index
    %c127 = arith.constant 127 : index
    %19 = vector.load %arg8[%c0_17, %c127] : memref<16x512xf32, #tpu.memory_space<vmem>>, vector<16x256xf32>
    %20 = vector.broadcast %4 : vector<1x256xf32> to vector<16x256xf32>
    %21 = arith.mulf %19, %20 : vector<16x256xf32>
    %c48 = arith.constant 48 : index
    %c0_18 = arith.constant 0 : index
    %22 = vector.load %arg9[%c48, %c0_18] : memref<144x256xf32, #tpu.memory_space<vmem>>, vector<16x256xf32>
    tpu.vector_store %arg9[%c48, %c0_18], %21 {strides = array<i32>} : memref<144x256xf32, #tpu.memory_space<vmem>>, vector<16x256xf32>,
    %c0_19 = arith.constant 0 : index
    %c128_20 = arith.constant 128 : index
    %23 = vector.load %arg8[%c0_19, %c128_20] : memref<16x512xf32, #tpu.memory_space<vmem>>, vector<16x256xf32>
    %c64 = arith.constant 64 : index
    %c0_21 = arith.constant 0 : index
    %24 = vector.load %arg9[%c64, %c0_21] : memref<144x256xf32, #tpu.memory_space<vmem>>, vector<16x256xf32>
    tpu.vector_store %arg9[%c64, %c0_21], %23 {strides = array<i32>} : memref<144x256xf32, #tpu.memory_space<vmem>>, vector<16x256xf32>,
    %c0_22 = arith.constant 0 : index
    %c129 = arith.constant 129 : index
    %25 = vector.load %arg8[%c0_22, %c129] : memref<16x512xf32, #tpu.memory_space<vmem>>, vector<16x256xf32>
    %26 = vector.broadcast %5 : vector<1x256xf32> to vector<16x256xf32>
    %27 = arith.mulf %25, %26 : vector<16x256xf32>
    %c80 = arith.constant 80 : index
    %c0_23 = arith.constant 0 : index
    %28 = vector.load %arg9[%c80, %c0_23] : memref<144x256xf32, #tpu.memory_space<vmem>>, vector<16x256xf32>
    tpu.vector_store %arg9[%c80, %c0_23], %27 {strides = array<i32>} : memref<144x256xf32, #tpu.memory_space<vmem>>, vector<16x256xf32>,
    %c0_24 = arith.constant 0 : index
    %c143 = arith.constant 143 : index
    %29 = vector.load %arg8[%c0_24, %c143] : memref<16x512xf32, #tpu.memory_space<vmem>>, vector<16x256xf32>
    %30 = vector.broadcast %4 : vector<1x256xf32> to vector<16x256xf32>
    %31 = arith.mulf %29, %30 : vector<16x256xf32>
    %c96 = arith.constant 96 : index
    %c0_25 = arith.constant 0 : index
    %32 = vector.load %arg9[%c96, %c0_25] : memref<144x256xf32, #tpu.memory_space<vmem>>, vector<16x256xf32>
    tpu.vector_store %arg9[%c96, %c0_25], %31 {strides = array<i32>} : memref<144x256xf32, #tpu.memory_space<vmem>>, vector<16x256xf32>,
    %c0_26 = arith.constant 0 : index
    %c144 = arith.constant 144 : index
    %33 = vector.load %arg8[%c0_26, %c144] : memref<16x512xf32, #tpu.memory_space<vmem>>, vector<16x256xf32>
    %c112_27 = arith.constant 112 : index
    %c0_28 = arith.constant 0 : index
    %34 = vector.load %arg9[%c112_27, %c0_28] : memref<144x256xf32, #tpu.memory_space<vmem>>, vector<16x256xf32>
    tpu.vector_store %arg9[%c112_27, %c0_28], %33 {strides = array<i32>} : memref<144x256xf32, #tpu.memory_space<vmem>>, vector<16x256xf32>,
    %c0_29 = arith.constant 0 : index
    %c145 = arith.constant 145 : index
    %35 = vector.load %arg8[%c0_29, %c145] : memref<16x512xf32, #tpu.memory_space<vmem>>, vector<16x256xf32>
    %36 = vector.broadcast %5 : vector<1x256xf32> to vector<16x256xf32>
    %37 = arith.mulf %35, %36 : vector<16x256xf32>
    %c128_30 = arith.constant 128 : index
    %c0_31 = arith.constant 0 : index
    %38 = vector.load %arg9[%c128_30, %c0_31] : memref<144x256xf32, #tpu.memory_space<vmem>>, vector<16x256xf32>
    tpu.vector_store %arg9[%c128_30, %c0_31], %37 {strides = array<i32>} : memref<144x256xf32, #tpu.memory_space<vmem>>, vector<16x256xf32>,
    %c0_32 = arith.constant 0 : index
    %c0_33 = arith.constant 0 : index
    %39 = vector.load %arg2[%c0_32, %c0_33] : memref<16x144xf32, #tpu.memory_space<vmem>>, vector<16x144xf32>
    %c0_34 = arith.constant 0 : index
    %c0_35 = arith.constant 0 : index
    %40 = vector.load %arg9[%c0_34, %c0_35] : memref<144x256xf32, #tpu.memory_space<vmem>>, vector<144x256xf32>
    %cst_36 = arith.constant dense<0.000000e+00> : vector<16x256xf32>
    %41 = tpu.matmul %39, %40, %cst_36 {dimension_numbers = #tpu.dot_dimension_numbers<[1], [0], [0], [1], [0, 0, 1, 1], [], []>} : vector<16x144xf32>, vector<144x256xf32>, vector<16x256xf32> -> vector<16x256xf32>
    %c0_37 = arith.constant 0 : index
    %c0_38 = arith.constant 0 : index
    %42 = vector.load %arg3[%c0_37, %c0_38] : memref<16x1xf32, #tpu.memory_space<vmem>>, vector<16x1xf32>
    %43 = vector.broadcast %42 : vector<16x1xf32> to vector<16x256xf32>
    %44 = arith.addf %41, %43 : vector<16x256xf32>
    %cst_39 = arith.constant 0.000000e+00 : f32
    %cst_40 = arith.constant 6.000000e+00 : f32
    %45 = vector.broadcast %cst_39 : f32 to vector<16x256xf32>
    %46 = arith.maximumf %45, %44 : vector<16x256xf32>
    %47 = vector.broadcast %cst_40 : f32 to vector<16x256xf32>
    %48 = arith.minimumf %47, %46 : vector<16x256xf32>
    %c0_41 = arith.constant 0 : index
    %c128_42 = arith.constant 128 : index
    %49 = vector.load %arg8[%c0_41, %c128_42] : memref<16x512xf32, #tpu.memory_space<vmem>>, vector<16x256xf32>
    tpu.vector_store %arg8[%c0_41, %c128_42], %48 {strides = array<i32>} : memref<16x512xf32, #tpu.memory_space<vmem>>, vector<16x256xf32>,
    %c0_43 = arith.constant 0 : index
    %c111_44 = arith.constant 111 : index
    %50 = vector.load %arg8[%c0_43, %c111_44] : memref<16x512xf32, #tpu.memory_space<vmem>>, vector<16x256xf32>
    %51 = vector.broadcast %4 : vector<1x256xf32> to vector<16x256xf32>
    %52 = arith.mulf %50, %51 : vector<16x256xf32>
    %c0_45 = arith.constant 0 : index
    %c0_46 = arith.constant 0 : index
    %53 = vector.load %arg9[%c0_45, %c0_46] : memref<144x256xf32, #tpu.memory_space<vmem>>, vector<16x256xf32>
    tpu.vector_store %arg9[%c0_45, %c0_46], %52 {strides = array<i32>} : memref<144x256xf32, #tpu.memory_space<vmem>>, vector<16x256xf32>,
    %c0_47 = arith.constant 0 : index
    %c112_48 = arith.constant 112 : index
    %54 = vector.load %arg8[%c0_47, %c112_48] : memref<16x512xf32, #tpu.memory_space<vmem>>, vector<16x256xf32>
    %c16_49 = arith.constant 16 : index
    %c0_50 = arith.constant 0 : index
    %55 = vector.load %arg9[%c16_49, %c0_50] : memref<144x256xf32, #tpu.memory_space<vmem>>, vector<16x256xf32>
    tpu.vector_store %arg9[%c16_49, %c0_50], %54 {strides = array<i32>} : memref<144x256xf32, #tpu.memory_space<vmem>>, vector<16x256xf32>,
    %c0_51 = arith.constant 0 : index
    %c113_52 = arith.constant 113 : index
    %56 = vector.load %arg8[%c0_51, %c113_52] : memref<16x512xf32, #tpu.memory_space<vmem>>, vector<16x256xf32>
    %57 = vector.broadcast %5 : vector<1x256xf32> to vector<16x256xf32>
    %58 = arith.mulf %56, %57 : vector<16x256xf32>
    %c32_53 = arith.constant 32 : index
    %c0_54 = arith.constant 0 : index
    %59 = vector.load %arg9[%c32_53, %c0_54] : memref<144x256xf32, #tpu.memory_space<vmem>>, vector<16x256xf32>
    tpu.vector_store %arg9[%c32_53, %c0_54], %58 {strides = array<i32>} : memref<144x256xf32, #tpu.memory_space<vmem>>, vector<16x256xf32>,
    %c0_55 = arith.constant 0 : index
    %c127_56 = arith.constant 127 : index
    %60 = vector.load %arg8[%c0_55, %c127_56] : memref<16x512xf32, #tpu.memory_space<vmem>>, vector<16x256xf32>
    %61 = vector.broadcast %4 : vector<1x256xf32> to vector<16x256xf32>
    %62 = arith.mulf %60, %61 : vector<16x256xf32>
    %c48_57 = arith.constant 48 : index
    %c0_58 = arith.constant 0 : index
    %63 = vector.load %arg9[%c48_57, %c0_58] : memref<144x256xf32, #tpu.memory_space<vmem>>, vector<16x256xf32>
    tpu.vector_store %arg9[%c48_57, %c0_58], %62 {strides = array<i32>} : memref<144x256xf32, #tpu.memory_space<vmem>>, vector<16x256xf32>,
    %c0_59 = arith.constant 0 : index
    %c128_60 = arith.constant 128 : index
    %64 = vector.load %arg8[%c0_59, %c128_60] : memref<16x512xf32, #tpu.memory_space<vmem>>, vector<16x256xf32>
    %c64_61 = arith.constant 64 : index
    %c0_62 = arith.constant 0 : index
    %65 = vector.load %arg9[%c64_61, %c0_62] : memref<144x256xf32, #tpu.memory_space<vmem>>, vector<16x256xf32>
    tpu.vector_store %arg9[%c64_61, %c0_62], %64 {strides = array<i32>} : memref<144x256xf32, #tpu.memory_space<vmem>>, vector<16x256xf32>,
    %c0_63 = arith.constant 0 : index
    %c129_64 = arith.constant 129 : index
    %66 = vector.load %arg8[%c0_63, %c129_64] : memref<16x512xf32, #tpu.memory_space<vmem>>, vector<16x256xf32>
    %67 = vector.broadcast %5 : vector<1x256xf32> to vector<16x256xf32>
    %68 = arith.mulf %66, %67 : vector<16x256xf32>
    %c80_65 = arith.constant 80 : index
    %c0_66 = arith.constant 0 : index
    %69 = vector.load %arg9[%c80_65, %c0_66] : memref<144x256xf32, #tpu.memory_space<vmem>>, vector<16x256xf32>
    tpu.vector_store %arg9[%c80_65, %c0_66], %68 {strides = array<i32>} : memref<144x256xf32, #tpu.memory_space<vmem>>, vector<16x256xf32>,
    %c0_67 = arith.constant 0 : index
    %c143_68 = arith.constant 143 : index
    %70 = vector.load %arg8[%c0_67, %c143_68] : memref<16x512xf32, #tpu.memory_space<vmem>>, vector<16x256xf32>
    %71 = vector.broadcast %4 : vector<1x256xf32> to vector<16x256xf32>
    %72 = arith.mulf %70, %71 : vector<16x256xf32>
    %c96_69 = arith.constant 96 : index
    %c0_70 = arith.constant 0 : index
    %73 = vector.load %arg9[%c96_69, %c0_70] : memref<144x256xf32, #tpu.memory_space<vmem>>, vector<16x256xf32>
    tpu.vector_store %arg9[%c96_69, %c0_70], %72 {strides = array<i32>} : memref<144x256xf32, #tpu.memory_space<vmem>>, vector<16x256xf32>,
    %c0_71 = arith.constant 0 : index
    %c144_72 = arith.constant 144 : index
    %74 = vector.load %arg8[%c0_71, %c144_72] : memref<16x512xf32, #tpu.memory_space<vmem>>, vector<16x256xf32>
    %c112_73 = arith.constant 112 : index
    %c0_74 = arith.constant 0 : index
    %75 = vector.load %arg9[%c112_73, %c0_74] : memref<144x256xf32, #tpu.memory_space<vmem>>, vector<16x256xf32>
    tpu.vector_store %arg9[%c112_73, %c0_74], %74 {strides = array<i32>} : memref<144x256xf32, #tpu.memory_space<vmem>>, vector<16x256xf32>,
    %c0_75 = arith.constant 0 : index
    %c145_76 = arith.constant 145 : index
    %76 = vector.load %arg8[%c0_75, %c145_76] : memref<16x512xf32, #tpu.memory_space<vmem>>, vector<16x256xf32>
    %77 = vector.broadcast %5 : vector<1x256xf32> to vector<16x256xf32>
    %78 = arith.mulf %76, %77 : vector<16x256xf32>
    %c128_77 = arith.constant 128 : index
    %c0_78 = arith.constant 0 : index
    %79 = vector.load %arg9[%c128_77, %c0_78] : memref<144x256xf32, #tpu.memory_space<vmem>>, vector<16x256xf32>
    tpu.vector_store %arg9[%c128_77, %c0_78], %78 {strides = array<i32>} : memref<144x256xf32, #tpu.memory_space<vmem>>, vector<16x256xf32>,
    %c0_79 = arith.constant 0 : index
    %c0_80 = arith.constant 0 : index
    %80 = vector.load %arg4[%c0_79, %c0_80] : memref<16x144xf32, #tpu.memory_space<vmem>>, vector<16x144xf32>
    %c0_81 = arith.constant 0 : index
    %c0_82 = arith.constant 0 : index
    %81 = vector.load %arg9[%c0_81, %c0_82] : memref<144x256xf32, #tpu.memory_space<vmem>>, vector<144x256xf32>
    %cst_83 = arith.constant dense<0.000000e+00> : vector<16x256xf32>
    %82 = tpu.matmul %80, %81, %cst_83 {dimension_numbers = #tpu.dot_dimension_numbers<[1], [0], [0], [1], [0, 0, 1, 1], [], []>} : vector<16x144xf32>, vector<144x256xf32>, vector<16x256xf32> -> vector<16x256xf32>
    %c0_84 = arith.constant 0 : index
    %c0_85 = arith.constant 0 : index
    %83 = vector.load %arg5[%c0_84, %c0_85] : memref<16x1xf32, #tpu.memory_space<vmem>>, vector<16x1xf32>
    %84 = vector.broadcast %83 : vector<16x1xf32> to vector<16x256xf32>
    %85 = arith.addf %82, %84 : vector<16x256xf32>
    %86 = arith.addf %85, %7 : vector<16x256xf32>
    %cst_86 = arith.constant 0.000000e+00 : f32
    %cst_87 = arith.constant 6.000000e+00 : f32
    %87 = vector.broadcast %cst_86 : f32 to vector<16x256xf32>
    %88 = arith.maximumf %87, %86 : vector<16x256xf32>
    %89 = vector.broadcast %cst_87 : f32 to vector<16x256xf32>
    %90 = arith.minimumf %89, %88 : vector<16x256xf32>
    %c0_88 = arith.constant 0 : index
    %c0_89 = arith.constant 0 : index
    %c0_90 = arith.constant 0 : index
    %91 = vector.load %arg7[%c0_88, %c0_89, %c0_90] : memref<2x16x256xf32, #tpu.memory_space<vmem>>, vector<1x16x256xf32>
    %92 = vector.shape_cast %91 : vector<1x16x256xf32> to vector<16x256xf32>
    %93 = vector.shape_cast %90 : vector<16x256xf32> to vector<1x16x256xf32>
    tpu.vector_store %arg7[%c0_88, %c0_89, %c0_90], %93 {strides = array<i32>} : memref<2x16x256xf32, #tpu.memory_space<vmem>>, vector<1x16x256xf32>,
    %c1_91 = arith.constant 1 : index
    %c0_92 = arith.constant 0 : index
    %c0_93 = arith.constant 0 : index
    %94 = vector.load %arg1[%c1_91, %c0_92, %c0_93] : memref<2x16x256xf32, #tpu.memory_space<vmem>>, vector<1x16x256xf32>
    %95 = vector.shape_cast %94 : vector<1x16x256xf32> to vector<16x256xf32>
    %c0_94 = arith.constant 0 : index
    %c128_95 = arith.constant 128 : index
    %96 = vector.load %arg8[%c0_94, %c128_95] : memref<16x512xf32, #tpu.memory_space<vmem>>, vector<16x256xf32>
    tpu.vector_store %arg8[%c0_94, %c128_95], %95 {strides = array<i32>} : memref<16x512xf32, #tpu.memory_space<vmem>>, vector<16x256xf32>,
    %c0_96 = arith.constant 0 : index
    %c111_97 = arith.constant 111 : index
    %97 = vector.load %arg8[%c0_96, %c111_97] : memref<16x512xf32, #tpu.memory_space<vmem>>, vector<16x256xf32>
    %98 = vector.broadcast %4 : vector<1x256xf32> to vector<16x256xf32>
    %99 = arith.mulf %97, %98 : vector<16x256xf32>
    %c0_98 = arith.constant 0 : index
    %c0_99 = arith.constant 0 : index
    %100 = vector.load %arg9[%c0_98, %c0_99] : memref<144x256xf32, #tpu.memory_space<vmem>>, vector<16x256xf32>
    tpu.vector_store %arg9[%c0_98, %c0_99], %99 {strides = array<i32>} : memref<144x256xf32, #tpu.memory_space<vmem>>, vector<16x256xf32>,
    %c0_100 = arith.constant 0 : index
    %c112_101 = arith.constant 112 : index
    %101 = vector.load %arg8[%c0_100, %c112_101] : memref<16x512xf32, #tpu.memory_space<vmem>>, vector<16x256xf32>
    %c16_102 = arith.constant 16 : index
    %c0_103 = arith.constant 0 : index
    %102 = vector.load %arg9[%c16_102, %c0_103] : memref<144x256xf32, #tpu.memory_space<vmem>>, vector<16x256xf32>
    tpu.vector_store %arg9[%c16_102, %c0_103], %101 {strides = array<i32>} : memref<144x256xf32, #tpu.memory_space<vmem>>, vector<16x256xf32>,
    %c0_104 = arith.constant 0 : index
    %c113_105 = arith.constant 113 : index
    %103 = vector.load %arg8[%c0_104, %c113_105] : memref<16x512xf32, #tpu.memory_space<vmem>>, vector<16x256xf32>
    %104 = vector.broadcast %5 : vector<1x256xf32> to vector<16x256xf32>
    %105 = arith.mulf %103, %104 : vector<16x256xf32>
    %c32_106 = arith.constant 32 : index
    %c0_107 = arith.constant 0 : index
    %106 = vector.load %arg9[%c32_106, %c0_107] : memref<144x256xf32, #tpu.memory_space<vmem>>, vector<16x256xf32>
    tpu.vector_store %arg9[%c32_106, %c0_107], %105 {strides = array<i32>} : memref<144x256xf32, #tpu.memory_space<vmem>>, vector<16x256xf32>,
    %c0_108 = arith.constant 0 : index
    %c127_109 = arith.constant 127 : index
    %107 = vector.load %arg8[%c0_108, %c127_109] : memref<16x512xf32, #tpu.memory_space<vmem>>, vector<16x256xf32>
    %108 = vector.broadcast %4 : vector<1x256xf32> to vector<16x256xf32>
    %109 = arith.mulf %107, %108 : vector<16x256xf32>
    %c48_110 = arith.constant 48 : index
    %c0_111 = arith.constant 0 : index
    %110 = vector.load %arg9[%c48_110, %c0_111] : memref<144x256xf32, #tpu.memory_space<vmem>>, vector<16x256xf32>
    tpu.vector_store %arg9[%c48_110, %c0_111], %109 {strides = array<i32>} : memref<144x256xf32, #tpu.memory_space<vmem>>, vector<16x256xf32>,
    %c0_112 = arith.constant 0 : index
    %c128_113 = arith.constant 128 : index
    %111 = vector.load %arg8[%c0_112, %c128_113] : memref<16x512xf32, #tpu.memory_space<vmem>>, vector<16x256xf32>
    %c64_114 = arith.constant 64 : index
    %c0_115 = arith.constant 0 : index
    %112 = vector.load %arg9[%c64_114, %c0_115] : memref<144x256xf32, #tpu.memory_space<vmem>>, vector<16x256xf32>
    tpu.vector_store %arg9[%c64_114, %c0_115], %111 {strides = array<i32>} : memref<144x256xf32, #tpu.memory_space<vmem>>, vector<16x256xf32>,
    %c0_116 = arith.constant 0 : index
    %c129_117 = arith.constant 129 : index
    %113 = vector.load %arg8[%c0_116, %c129_117] : memref<16x512xf32, #tpu.memory_space<vmem>>, vector<16x256xf32>
    %114 = vector.broadcast %5 : vector<1x256xf32> to vector<16x256xf32>
    %115 = arith.mulf %113, %114 : vector<16x256xf32>
    %c80_118 = arith.constant 80 : index
    %c0_119 = arith.constant 0 : index
    %116 = vector.load %arg9[%c80_118, %c0_119] : memref<144x256xf32, #tpu.memory_space<vmem>>, vector<16x256xf32>
    tpu.vector_store %arg9[%c80_118, %c0_119], %115 {strides = array<i32>} : memref<144x256xf32, #tpu.memory_space<vmem>>, vector<16x256xf32>,
    %c0_120 = arith.constant 0 : index
    %c143_121 = arith.constant 143 : index
    %117 = vector.load %arg8[%c0_120, %c143_121] : memref<16x512xf32, #tpu.memory_space<vmem>>, vector<16x256xf32>
    %118 = vector.broadcast %4 : vector<1x256xf32> to vector<16x256xf32>
    %119 = arith.mulf %117, %118 : vector<16x256xf32>
    %c96_122 = arith.constant 96 : index
    %c0_123 = arith.constant 0 : index
    %120 = vector.load %arg9[%c96_122, %c0_123] : memref<144x256xf32, #tpu.memory_space<vmem>>, vector<16x256xf32>
    tpu.vector_store %arg9[%c96_122, %c0_123], %119 {strides = array<i32>} : memref<144x256xf32, #tpu.memory_space<vmem>>, vector<16x256xf32>,
    %c0_124 = arith.constant 0 : index
    %c144_125 = arith.constant 144 : index
    %121 = vector.load %arg8[%c0_124, %c144_125] : memref<16x512xf32, #tpu.memory_space<vmem>>, vector<16x256xf32>
    %c112_126 = arith.constant 112 : index
    %c0_127 = arith.constant 0 : index
    %122 = vector.load %arg9[%c112_126, %c0_127] : memref<144x256xf32, #tpu.memory_space<vmem>>, vector<16x256xf32>
    tpu.vector_store %arg9[%c112_126, %c0_127], %121 {strides = array<i32>} : memref<144x256xf32, #tpu.memory_space<vmem>>, vector<16x256xf32>,
    %c0_128 = arith.constant 0 : index
    %c145_129 = arith.constant 145 : index
    %123 = vector.load %arg8[%c0_128, %c145_129] : memref<16x512xf32, #tpu.memory_space<vmem>>, vector<16x256xf32>
    %124 = vector.broadcast %5 : vector<1x256xf32> to vector<16x256xf32>
    %125 = arith.mulf %123, %124 : vector<16x256xf32>
    %c128_130 = arith.constant 128 : index
    %c0_131 = arith.constant 0 : index
    %126 = vector.load %arg9[%c128_130, %c0_131] : memref<144x256xf32, #tpu.memory_space<vmem>>, vector<16x256xf32>
    tpu.vector_store %arg9[%c128_130, %c0_131], %125 {strides = array<i32>} : memref<144x256xf32, #tpu.memory_space<vmem>>, vector<16x256xf32>,
    %c0_132 = arith.constant 0 : index
    %c0_133 = arith.constant 0 : index
    %127 = vector.load %arg2[%c0_132, %c0_133] : memref<16x144xf32, #tpu.memory_space<vmem>>, vector<16x144xf32>
    %c0_134 = arith.constant 0 : index
    %c0_135 = arith.constant 0 : index
    %128 = vector.load %arg9[%c0_134, %c0_135] : memref<144x256xf32, #tpu.memory_space<vmem>>, vector<144x256xf32>
    %cst_136 = arith.constant dense<0.000000e+00> : vector<16x256xf32>
    %129 = tpu.matmul %127, %128, %cst_136 {dimension_numbers = #tpu.dot_dimension_numbers<[1], [0], [0], [1], [0, 0, 1, 1], [], []>} : vector<16x144xf32>, vector<144x256xf32>, vector<16x256xf32> -> vector<16x256xf32>
    %c0_137 = arith.constant 0 : index
    %c0_138 = arith.constant 0 : index
    %130 = vector.load %arg3[%c0_137, %c0_138] : memref<16x1xf32, #tpu.memory_space<vmem>>, vector<16x1xf32>
    %131 = vector.broadcast %130 : vector<16x1xf32> to vector<16x256xf32>
    %132 = arith.addf %129, %131 : vector<16x256xf32>
    %cst_139 = arith.constant 0.000000e+00 : f32
    %cst_140 = arith.constant 6.000000e+00 : f32
    %133 = vector.broadcast %cst_139 : f32 to vector<16x256xf32>
    %134 = arith.maximumf %133, %132 : vector<16x256xf32>
    %135 = vector.broadcast %cst_140 : f32 to vector<16x256xf32>
    %136 = arith.minimumf %135, %134 : vector<16x256xf32>
    %c0_141 = arith.constant 0 : index
    %c128_142 = arith.constant 128 : index
    %137 = vector.load %arg8[%c0_141, %c128_142] : memref<16x512xf32, #tpu.memory_space<vmem>>, vector<16x256xf32>
    tpu.vector_store %arg8[%c0_141, %c128_142], %136 {strides = array<i32>} : memref<16x512xf32, #tpu.memory_space<vmem>>, vector<16x256xf32>,
    %c0_143 = arith.constant 0 : index
    %c111_144 = arith.constant 111 : index
    %138 = vector.load %arg8[%c0_143, %c111_144] : memref<16x512xf32, #tpu.memory_space<vmem>>, vector<16x256xf32>
    %139 = vector.broadcast %4 : vector<1x256xf32> to vector<16x256xf32>
    %140 = arith.mulf %138, %139 : vector<16x256xf32>
    %c0_145 = arith.constant 0 : index
    %c0_146 = arith.constant 0 : index
    %141 = vector.load %arg9[%c0_145, %c0_146] : memref<144x256xf32, #tpu.memory_space<vmem>>, vector<16x256xf32>
    tpu.vector_store %arg9[%c0_145, %c0_146], %140 {strides = array<i32>} : memref<144x256xf32, #tpu.memory_space<vmem>>, vector<16x256xf32>,
    %c0_147 = arith.constant 0 : index
    %c112_148 = arith.constant 112 : index
    %142 = vector.load %arg8[%c0_147, %c112_148] : memref<16x512xf32, #tpu.memory_space<vmem>>, vector<16x256xf32>
    %c16_149 = arith.constant 16 : index
    %c0_150 = arith.constant 0 : index
    %143 = vector.load %arg9[%c16_149, %c0_150] : memref<144x256xf32, #tpu.memory_space<vmem>>, vector<16x256xf32>
    tpu.vector_store %arg9[%c16_149, %c0_150], %142 {strides = array<i32>} : memref<144x256xf32, #tpu.memory_space<vmem>>, vector<16x256xf32>,
    %c0_151 = arith.constant 0 : index
    %c113_152 = arith.constant 113 : index
    %144 = vector.load %arg8[%c0_151, %c113_152] : memref<16x512xf32, #tpu.memory_space<vmem>>, vector<16x256xf32>
    %145 = vector.broadcast %5 : vector<1x256xf32> to vector<16x256xf32>
    %146 = arith.mulf %144, %145 : vector<16x256xf32>
    %c32_153 = arith.constant 32 : index
    %c0_154 = arith.constant 0 : index
    %147 = vector.load %arg9[%c32_153, %c0_154] : memref<144x256xf32, #tpu.memory_space<vmem>>, vector<16x256xf32>
    tpu.vector_store %arg9[%c32_153, %c0_154], %146 {strides = array<i32>} : memref<144x256xf32, #tpu.memory_space<vmem>>, vector<16x256xf32>,
    %c0_155 = arith.constant 0 : index
    %c127_156 = arith.constant 127 : index
    %148 = vector.load %arg8[%c0_155, %c127_156] : memref<16x512xf32, #tpu.memory_space<vmem>>, vector<16x256xf32>
    %149 = vector.broadcast %4 : vector<1x256xf32> to vector<16x256xf32>
    %150 = arith.mulf %148, %149 : vector<16x256xf32>
    %c48_157 = arith.constant 48 : index
    %c0_158 = arith.constant 0 : index
    %151 = vector.load %arg9[%c48_157, %c0_158] : memref<144x256xf32, #tpu.memory_space<vmem>>, vector<16x256xf32>
    tpu.vector_store %arg9[%c48_157, %c0_158], %150 {strides = array<i32>} : memref<144x256xf32, #tpu.memory_space<vmem>>, vector<16x256xf32>,
    %c0_159 = arith.constant 0 : index
    %c128_160 = arith.constant 128 : index
    %152 = vector.load %arg8[%c0_159, %c128_160] : memref<16x512xf32, #tpu.memory_space<vmem>>, vector<16x256xf32>
    %c64_161 = arith.constant 64 : index
    %c0_162 = arith.constant 0 : index
    %153 = vector.load %arg9[%c64_161, %c0_162] : memref<144x256xf32, #tpu.memory_space<vmem>>, vector<16x256xf32>
    tpu.vector_store %arg9[%c64_161, %c0_162], %152 {strides = array<i32>} : memref<144x256xf32, #tpu.memory_space<vmem>>, vector<16x256xf32>,
    %c0_163 = arith.constant 0 : index
    %c129_164 = arith.constant 129 : index
    %154 = vector.load %arg8[%c0_163, %c129_164] : memref<16x512xf32, #tpu.memory_space<vmem>>, vector<16x256xf32>
    %155 = vector.broadcast %5 : vector<1x256xf32> to vector<16x256xf32>
    %156 = arith.mulf %154, %155 : vector<16x256xf32>
    %c80_165 = arith.constant 80 : index
    %c0_166 = arith.constant 0 : index
    %157 = vector.load %arg9[%c80_165, %c0_166] : memref<144x256xf32, #tpu.memory_space<vmem>>, vector<16x256xf32>
    tpu.vector_store %arg9[%c80_165, %c0_166], %156 {strides = array<i32>} : memref<144x256xf32, #tpu.memory_space<vmem>>, vector<16x256xf32>,
    %c0_167 = arith.constant 0 : index
    %c143_168 = arith.constant 143 : index
    %158 = vector.load %arg8[%c0_167, %c143_168] : memref<16x512xf32, #tpu.memory_space<vmem>>, vector<16x256xf32>
    %159 = vector.broadcast %4 : vector<1x256xf32> to vector<16x256xf32>
    %160 = arith.mulf %158, %159 : vector<16x256xf32>
    %c96_169 = arith.constant 96 : index
    %c0_170 = arith.constant 0 : index
    %161 = vector.load %arg9[%c96_169, %c0_170] : memref<144x256xf32, #tpu.memory_space<vmem>>, vector<16x256xf32>
    tpu.vector_store %arg9[%c96_169, %c0_170], %160 {strides = array<i32>} : memref<144x256xf32, #tpu.memory_space<vmem>>, vector<16x256xf32>,
    %c0_171 = arith.constant 0 : index
    %c144_172 = arith.constant 144 : index
    %162 = vector.load %arg8[%c0_171, %c144_172] : memref<16x512xf32, #tpu.memory_space<vmem>>, vector<16x256xf32>
    %c112_173 = arith.constant 112 : index
    %c0_174 = arith.constant 0 : index
    %163 = vector.load %arg9[%c112_173, %c0_174] : memref<144x256xf32, #tpu.memory_space<vmem>>, vector<16x256xf32>
    tpu.vector_store %arg9[%c112_173, %c0_174], %162 {strides = array<i32>} : memref<144x256xf32, #tpu.memory_space<vmem>>, vector<16x256xf32>,
    %c0_175 = arith.constant 0 : index
    %c145_176 = arith.constant 145 : index
    %164 = vector.load %arg8[%c0_175, %c145_176] : memref<16x512xf32, #tpu.memory_space<vmem>>, vector<16x256xf32>
    %165 = vector.broadcast %5 : vector<1x256xf32> to vector<16x256xf32>
    %166 = arith.mulf %164, %165 : vector<16x256xf32>
    %c128_177 = arith.constant 128 : index
    %c0_178 = arith.constant 0 : index
    %167 = vector.load %arg9[%c128_177, %c0_178] : memref<144x256xf32, #tpu.memory_space<vmem>>, vector<16x256xf32>
    tpu.vector_store %arg9[%c128_177, %c0_178], %166 {strides = array<i32>} : memref<144x256xf32, #tpu.memory_space<vmem>>, vector<16x256xf32>,
    %c0_179 = arith.constant 0 : index
    %c0_180 = arith.constant 0 : index
    %168 = vector.load %arg4[%c0_179, %c0_180] : memref<16x144xf32, #tpu.memory_space<vmem>>, vector<16x144xf32>
    %c0_181 = arith.constant 0 : index
    %c0_182 = arith.constant 0 : index
    %169 = vector.load %arg9[%c0_181, %c0_182] : memref<144x256xf32, #tpu.memory_space<vmem>>, vector<144x256xf32>
    %cst_183 = arith.constant dense<0.000000e+00> : vector<16x256xf32>
    %170 = tpu.matmul %168, %169, %cst_183 {dimension_numbers = #tpu.dot_dimension_numbers<[1], [0], [0], [1], [0, 0, 1, 1], [], []>} : vector<16x144xf32>, vector<144x256xf32>, vector<16x256xf32> -> vector<16x256xf32>
    %c0_184 = arith.constant 0 : index
    %c0_185 = arith.constant 0 : index
    %171 = vector.load %arg5[%c0_184, %c0_185] : memref<16x1xf32, #tpu.memory_space<vmem>>, vector<16x1xf32>
    %172 = vector.broadcast %171 : vector<16x1xf32> to vector<16x256xf32>
    %173 = arith.addf %170, %172 : vector<16x256xf32>
    %174 = arith.addf %173, %95 : vector<16x256xf32>
    %cst_186 = arith.constant 0.000000e+00 : f32
    %cst_187 = arith.constant 6.000000e+00 : f32
    %175 = vector.broadcast %cst_186 : f32 to vector<16x256xf32>
    %176 = arith.maximumf %175, %174 : vector<16x256xf32>
    %177 = vector.broadcast %cst_187 : f32 to vector<16x256xf32>
    %178 = arith.minimumf %177, %176 : vector<16x256xf32>
    %c1_188 = arith.constant 1 : index
    %c0_189 = arith.constant 0 : index
    %c0_190 = arith.constant 0 : index
    %179 = vector.load %arg7[%c1_188, %c0_189, %c0_190] : memref<2x16x256xf32, #tpu.memory_space<vmem>>, vector<1x16x256xf32>
    %180 = vector.shape_cast %179 : vector<1x16x256xf32> to vector<16x256xf32>
    %181 = vector.shape_cast %178 : vector<16x256xf32> to vector<1x16x256xf32>
    tpu.vector_store %arg7[%c1_188, %c0_189, %c0_190], %181 {strides = array<i32>} : memref<2x16x256xf32, #tpu.memory_space<vmem>>, vector<1x16x256xf32>,
    return
  }
  func.func @transform_0(%arg0: i32) -> (i32, i32, i32) {
    %c0_i32 = arith.constant 0 : i32
    %c0_i32_0 = arith.constant 0 : i32
    %c0_i32_1 = arith.constant 0 : i32
    return %arg0, %c0_i32, %c0_i32_0 : i32, i32, i32
  }
  func.func @transform_1(%arg0: i32) -> (i32, i32) {
    %c0_i32 = arith.constant 0 : i32
    %c0_i32_0 = arith.constant 0 : i32
    %c0_i32_1 = arith.constant 0 : i32
    return %c0_i32, %c0_i32_0 : i32, i32
  }
  func.func @transform_2(%arg0: i32) -> (i32, i32) {
    %c0_i32 = arith.constant 0 : i32
    %c0_i32_0 = arith.constant 0 : i32
    %c0_i32_1 = arith.constant 0 : i32
    return %c0_i32, %c0_i32_0 : i32, i32
  }
  func.func @transform_3(%arg0: i32) -> (i32, i32) {
    %c0_i32 = arith.constant 0 : i32
    %c0_i32_0 = arith.constant 0 : i32
    %c0_i32_1 = arith.constant 0 : i32
    return %c0_i32, %c0_i32_0 : i32, i32
  }
  func.func @transform_4(%arg0: i32) -> (i32, i32) {
    %c0_i32 = arith.constant 0 : i32
    %c0_i32_0 = arith.constant 0 : i32
    %c0_i32_1 = arith.constant 0 : i32
    return %c0_i32, %c0_i32_0 : i32, i32
  }
  func.func @transform_5(%arg0: i32) -> (i32, i32) {
    %c0_i32 = arith.constant 0 : i32
    %c0_i32_0 = arith.constant 0 : i32
    %c0_i32_1 = arith.constant 0 : i32
    return %c0_i32, %c0_i32_0 : i32, i32
  }
  func.func @transform_6(%arg0: i32) -> (i32, i32, i32) {
    %c0_i32 = arith.constant 0 : i32
    %c0_i32_0 = arith.constant 0 : i32
    %c0_i32_1 = arith.constant 0 : i32
    return %arg0, %c0_i32, %c0_i32_0 : i32, i32, i32
  }
}

</mosaic_0001>

<bundles_post_ra>
// kernel: tpu_custom_call.1
= control target key start
LH: loop header
LB: loop body
LE: loop exit
PB: predicated region body
PF: predicated region fallthrough
CT: control target
= control target key end

     0   :  { %11 = vsyncpa [#allocation5], 0  ;;  %s3887_s0 = inlined_call_operand.hbm [shape: f32[2,16,256], index: 0, kind: input, shape index: {}]   ;;  %s3888_s1 = inlined_call_operand.vmem [shape: f32[16,144], index: 1, kind: input, shape index: {}]   ;;  %s3889_s2 = inlined_call_operand.vmem [shape: f32[16,1], index: 2, kind: input, shape index: {}]   ;;  %s3890_s3 = inlined_call_operand.hbm [shape: f32[16,144], index: 3, kind: input, shape index: {}]   ;;  %s3891_s4 = inlined_call_operand.vmem [shape: f32[16,1], index: 4, kind: input, shape index: {}]   ;;  %s3892_s5 = inlined_call_operand.vmem [shape: f32[2,256], index: 5, kind: input, shape index: {}]   ;;  %s3893_s6 = inlined_call_operand.hbm [shape: f32[2,16,256], index: 6, kind: output, shape index: {}]  }
   0x1   :  { %12 = vsyncpa [#allocation8], 0 }
   0x2   :  { %13 = vsyncpa [#allocation6], 0  ;;  %s18_s23 = sshll.u32 %s3887_s0, 4  ;;  %s2751_s24 = smov [#allocation4]   ;;  %s19_s23 = int_to_ptr.hbm [resolvable:$true] %s18_s23 }
   0x3   :  { %s20_s25 = sshll.u32 %s2751_s24, 4  ;;  %s35_s28 = sshll.u32 %s3890_s3, 4  ;;  %s21_s25 = int_to_ptr.vmem [resolvable:$true] %s20_s25  ;;  %s36_s28 = int_to_ptr.hbm [resolvable:$true] %s35_s28 }
   0x4   :  { %s2752_s29 = smov 256   ;;  %s2753_s30 = smov 16  }
   0x5   :  { %26 = dma.hbm_to_vmem [thread:$0]  %s19_s23, 1024, %s21_s25, [#allocation5], %s2752_s29, %s2752_s29, %s2753_s30  }
   0x6   :  { %s2754_s7 = smov [#allocation7]  }
   0x7   :  { %s37_s8 = sshll.u32 %s2754_s7, 4  ;;  %s38_s8 = int_to_ptr.vmem [resolvable:$true] %s37_s8 }
   0x8   :  { %43 = dma.hbm_to_vmem [thread:$0]  %s36_s28, 512, %s38_s8, [#allocation8], %s2752_s29, %s2752_s29, %s2753_s30  }
   0x9   :  { %2745 = dma.done.wait [#allocation5], 1024  }
   0xa   :  { %2746 = vsyncadd [#allocation5], 4294966272 }
   0xb   :  { %2747 = dma.done.wait [#allocation8], 512  }
   0xc   :  { %2748 = vsyncadd [#allocation8], 4294966784  ;;  %v2147_v0 = vld [vmem:[%s3892_s5 + $0x1] ss:$2 sm:$0x3]  ;;  %s2755_s11 = smov 1  }
   0xd   :  { %v60_v1 = vld [vmem:[%s3892_s5] ss:$2 sm:$0x3]  ;;  %v170_v2 = vperm.slane %v2147_v0, 0  ;;  %s2756_s12 = smov 15   ;;  %s2757_s13 = smov 127  }
   0xe   :  { %v78_v3 = vperm.slane %v60_v1, 0  ;;  %v171_v4 = vperm.slane %v2147_v0, 1  ;;  %v79_v5 = vperm.slane %v60_v1, 1  ;;  %s2758_s5 = smov 113   ;;  %s2759_s14 = smov 111   ;;  %v2830_v6 = vld [vmem:[#allocation4 + $0x8] sm:$0xff] }
   0xf   :  { %284 = vrot.lane.b32.xlu1 %v170_v2, %s2755_s11  ;;  %s2760_s15 = smov 17   ;;  %v2832_v7 = vld [vmem:[#allocation4 + $0x18] sm:$0xff]  ;;  %v2187_v8 = vpack.i.bf16 0.0, %v2830_v6  ;;  %v2836_v10 = vld [vmem:[#allocation4 + $0x10] sm:$0xff]  ;;  %s2761_s16 = smov 112   ;;  %v2842_v12 = vld [vmem:[#allocation4] sm:$0xff] }
  0x10   :  { %334 = vrot.lane.b32.xlu0 %v78_v3, %s2756_s12  ;;  %224 = vrot.lane.b32.xlu2 %v78_v3, %s2757_s13  ;;  %v2182_v9 = vpack.i.bf16 0.0, %v2832_v7  ;;  %v2197_v11 = vpack.i.bf16 %v2832_v7, %v2836_v10  ;;  %v2192_v13 = vpack.i.bf16 %v2842_v12, %v2836_v10  ;;  %v2202_v14 = vpack.i.bf16 %v2830_v6, %v2842_v12  ;;  %s2133_s10 = sshll.u32 %s3893_s6, 4  ;;  %s2134_s10 = int_to_ptr.hbm [resolvable:$true] %s2133_s10 }
  0x11   :  { %vm205_vm0 = vcmask 121856   ;;  %vm257_vm1 = vcmask 7168   ;;  %v2762_v36 = vmov 0   ;;  %vm228_vm2 = vcmask 1039360  }
  0x12   :  { %2303 = vset.pattern.permute.xlu1 %v2762_v36  ;;  %2302 = vset.pattern.permute.xlu0 %v2762_v36  ;;  %vm176_vm3 = vcmask 924672   ;;  %vm84_vm4 = vcmask 908288   ;;  %vm113_vm5 = vcmask 138240   ;;  %vm402_vm6 = vcmask 916480  }
  0x13   :  { %2504 = vset.pattern.permute.xlu2 %v2762_v36  ;;  %vm150_vm7 = vcmask 130048  }
  0x17   :  { %286 = vrot.lane.b32.xlu1 %v171_v4, %s2755_s11 }
  0x18   :  { %336 = vrot.lane.b32.xlu0 %v79_v5, %s2756_s12  ;;  %226 = vrot.lane.b32.xlu2 %v79_v5, %s2757_s13 }
  0x1f   :  { %174 = vrot.lane.b32.xlu1 %v171_v4, %s2758_s5 }
  0x20   :  { %172 = vrot.lane.b32.xlu0 %v170_v2, %s2758_s5  ;;  %80 = vrot.lane.b32.xlu2 %v78_v3, %s2759_s14 }
  0x27   :  { %421 = vrot.lane.b32.xlu1 %v170_v2, %s2760_s15 }
  0x28   :  { %82 = vrot.lane.b32.xlu0 %v79_v5, %s2759_s14  ;;  %423 = vrot.lane.b32.xlu2 %v171_v4, %s2760_s15 }
  0x2f   :  { %2188 = vrot.lane.b32.xlu1 %v2187_v8, %s2761_s16  ;;  %v3894_v8 = vmov 0.0  }
  0x30   :  { %2183 = vrot.lane.b32.xlu0 %v2182_v9, %s2761_s16  ;;  %2198 = vrot.lane.b32.xlu2 %v2197_v11, %s2753_s30 }
  0x37   :  { %2193 = vrot.lane.b32.xlu1 %v2192_v13, %s2761_s16 }
  0x38   :  { %2203 = vrot.lane.b32.xlu0 %v2202_v14, %s2753_s30 }
  0x6a   :  { %v225_v23 = vpop.permute.xlu2 %224 }
  0x6b   :  { %v2863_v24 = vmul.f32 0.0, %v225_v23 }
  0x6d   :  { %v2217_v28 = vpack.i.bf16 %v2863_v24, %v2863_v24 }
  0x72   :  { %v2886_v35 = vpop.permute.xlu2 %226 }
  0x73   :  { %3929 = vst [vmem:[#allocation15_spill] sm:$0xff] %v2886_v35  ;;  %v2906_v46 = vsel %vm228_vm2, %v225_v23, %v2886_v35  ;;  %v235_v50 = vmul.f32 %v2886_v35, %v2830_v6  ;;  %v238_v51 = vmul.f32 %v2886_v35, %v2832_v7  ;;  %v2979_v23 = vld [vmem:[%s3889_s2] sm:$0xff] }
  0x74   :  { %v234_v49 = vmul.f32 %v2906_v46, %v2842_v12  ;;  %v237_v52 = vmul.f32 %v2906_v46, %v2836_v10 }
  0x76   :  { %v2252_v56 = vpack.i.bf16 %v235_v50, %v234_v49  ;;  %v2247_v58 = vpack.i.bf16 %v238_v51, %v237_v52 }
  0x7a   :  { %v81_v48 = vpop.permute.xlu2 %80 }
  0x7b   :  { %v2950_v5 = vmul.f32 0.0, %v81_v48 }
  0x81   :  { %v2851_v15 = vpop.permute.xlu1 %284 }
  0x82   :  { %3927 = vst [vmem:[#allocation13_spill] sm:$0xff] %v2851_v15  ;;  %v2853_v16 = vpop.permute.xlu0 %334  ;;  %v292_v19 = vmul.f32 %v2851_v15, %v2842_v12  ;;  %v295_v20 = vmul.f32 %v2851_v15, %v2836_v10  ;;  %v424_v1 = vpop.permute.xlu2 %423 }
  0x83   :  { %v342_v17 = vmul.f32 %v2853_v16, %v2842_v12  ;;  %v345_v18 = vmul.f32 %v2853_v16, %v2836_v10  ;;  %v2956_v9 = vmul.f32 0.0, %v424_v1 }
  0x84   :  { %v2212_v22 = vpack.i.bf16 %v292_v19, %v295_v20 }
  0x85   :  { %v2207_v21 = vpack.i.bf16 %v342_v17, %v345_v18  ;;  %v2292_v17 = vpack.i.bf16 %v2950_v5, %v2950_v5 }
  0x86   :  { %2213 = vrot.lane.b32.xlu2 %v2212_v22, %s2757_s13 }
  0x87   :  { %2208 = vrot.lane.b32.xlu1 %v2207_v21, %s2758_s5 }
  0x89   :  { %v287_v29 = vpop.permute.xlu1 %286 }
  0x8a   :  { %v337_v25 = vpop.permute.xlu0 %336  ;;  %v2883_v34 = vsel %vm257_vm1, %v2851_v15, %v287_v29  ;;  %v2890_v37 = vmul.f32 0.0, %v287_v29  ;;  %v2985_v29 = vld [vmem:[#allocation4 + $0x30] sm:$0xff] }
  0x8b   :  { %v2869_v26 = vsel %vm205_vm0, %v2853_v16, %v337_v25  ;;  %v2871_v27 = vmul.f32 0.0, %v337_v25  ;;  %3928 = vst [vmem:[#allocation14_spill] sm:$0xff] %v2883_v34  ;;  %v296_v39 = vmul.f32 %v2883_v34, %v2832_v7  ;;  %v293_v40 = vmul.f32 %v2883_v34, %v2830_v6 }
  0x8c   :  { %v346_v30 = vmul.f32 %v2869_v26, %v2832_v7  ;;  %v343_v31 = vmul.f32 %v2869_v26, %v2830_v6 }
  0x8d   :  { %v2237_v44 = vpack.i.bf16 %v2890_v37, %v296_v39  ;;  %v2242_v45 = vpack.i.bf16 %v2890_v37, %v293_v40  ;;  %v1313_v39 = vmul.f32 %v2985_v29, %v2851_v15 }
  0x8e   :  { %v2227_v32 = vpack.i.bf16 %v2871_v27, %v346_v30  ;;  %v2232_v33 = vpack.i.bf16 %v2871_v27, %v343_v31  ;;  %v2987_v30 = vld [vmem:[#allocation4 + $0x38] sm:$0xff] }
  0x8f   :  { %2218 = vrot.lane.b32.xlu1 %v2217_v28, %s2755_s11  ;;  %v2304_v31 = vpack.i.bf16 %v2987_v30, %v2985_v29  ;;  %v1314_v40 = vmul.f32 %v2987_v30, %v2883_v34 }
  0x90   :  { %2228 = vrot.lane.b32.xlu2 %v2227_v32, %s2758_s5  ;;  %2233 = vrot.lane.b32.xlu0 %v2232_v33, %s2758_s5  ;;  %v2991_v32 = vld [vmem:[#allocation4 + $0x20] sm:$0xff]  ;;  %v2993_v33 = vld [vmem:[#allocation4 + $0x28] sm:$0xff] }
  0x91   :  { %v2898_v42 = vpop.permute.xlu1 %174  ;;  %v2309_v36 = vpack.i.bf16 %v2993_v33, %v2991_v32 }
  0x92   :  { %v173_v38 = vpop.permute.xlu0 %172  ;;  %3930 = vst [vmem:[#allocation16_spill] sm:$0xff] %v2898_v42  ;;  %v186_v54 = vmul.f32 %v2898_v42, %v2832_v7  ;;  %v183_v63 = vmul.f32 %v2898_v42, %v2830_v6 }
  0x93   :  { %v2896_v41 = vmul.f32 0.0, %v173_v38  ;;  %v2911_v47 = vsel %vm176_vm3, %v173_v38, %v2898_v42  ;;  %v3000_v38 = vld [vmem:[%s3889_s2 + $0x8] sm:$0xff] }
  0x94   :  { %v185_v53 = vmul.f32 %v2911_v47, %v2836_v10  ;;  %v182_v62 = vmul.f32 %v2911_v47, %v2842_v12 }
  0x95   :  { %v2222_v43 = vpack.i.bf16 %v2896_v41, %v2896_v41 }
  0x96   :  { %v2262_v59 = vpack.i.bf16 %v186_v54, %v185_v53  ;;  %v2267_v4 = vpack.i.bf16 %v183_v63, %v182_v62  ;;  %v1353_v53 = vmul.f32 %v2993_v33, %v2869_v26  ;;  %v1356_v54 = vmul.f32 %v2987_v30, %v2869_v26 }
  0x97   :  { %2223 = vrot.lane.b32.xlu1 %v2222_v43, %s2756_s12 }
  0x98   :  { %2238 = vrot.lane.b32.xlu2 %v2237_v44, %s2757_s13  ;;  %2243 = vrot.lane.b32.xlu0 %v2242_v45, %s2757_s13  ;;  %v2334_v44 = vpack.i.bf16 %v1314_v40, %v1313_v39 }
  0x99   :  { %v2944_v0 = vpop.permute.xlu1 %421 }
  0x9a   :  { %v2927_v55 = vpop.permute.xlu0 %82  ;;  %v2948_v3 = vsel %vm113_vm5, %v2944_v0, %v424_v1  ;;  %v429_v20 = vmul.f32 %v2944_v0, %v2842_v12  ;;  %v432_v21 = vmul.f32 %v2944_v0, %v2836_v10 }
  0x9b   :  { %3931 = vst [vmem:[#allocation17_spill] sm:$0xff] %v2927_v55  ;;  %v2931_v57 = vsel %vm84_vm4, %v81_v48, %v2927_v55  ;;  %v94_v61 = vmul.f32 %v2927_v55, %v2832_v7  ;;  %v433_v11 = vmul.f32 %v2948_v3, %v2832_v7  ;;  %v91_v14 = vmul.f32 %v2927_v55, %v2830_v6 }
  0x9c   :  { %v93_v60 = vmul.f32 %v2931_v57, %v2836_v10  ;;  %v90_v13 = vmul.f32 %v2931_v57, %v2842_v12  ;;  %v430_v22 = vmul.f32 %v2948_v3, %v2830_v6  ;;  %v2297_v25 = vpack.i.bf16 %v429_v20, %v432_v21 }
  0x9d   :  { %v2282_v18 = vpack.i.bf16 %v2956_v9, %v433_v11  ;;  %v3011_v48 = vpack.i.bf16 %v2871_v27, %v2871_v27  ;;  %v1352_v27 = vmul.f32 %v2991_v32, %v2853_v16  ;;  %v1310_v11 = vmul.f32 %v2991_v32, %v2851_v15 }
  0x9e   :  { %v2272_v2 = vpack.i.bf16 %v94_v61, %v93_v60  ;;  %v2277_v19 = vpack.i.bf16 %v91_v14, %v90_v13  ;;  %v2287_v28 = vpack.i.bf16 %v2956_v9, %v430_v22  ;;  %v1311_v13 = vmul.f32 %v2993_v33, %v2883_v34 }
  0x9f   :  { %2253 = vrot.lane.b32.xlu1 %v2252_v56, %s2755_s11  ;;  %v2329_v62 = vpack.i.bf16 %v1353_v53, %v1352_v27 }
  0xa0   :  { %2248 = vrot.lane.b32.xlu0 %v2247_v58, %s2755_s11  ;;  %2263 = vrot.lane.b32.xlu2 %v2262_v59, %s2756_s12  ;;  %v1355_v58 = vmul.f32 %v2985_v29, %v2853_v16 }
  0xa1   :  { %v2189_v43 = vpop.permute.xlu1 %2188 }
  0xa2   :  { %v2184_v45 = vpop.permute.xlu0 %2183  ;;  %v2191_v49 = vunpack.i.h.bf16 %v2189_v43  ;;  %v2190_v50 = vunpack.i.l.bf16 %v2189_v43  ;;  %v2324_v63 = vpack.i.bf16 %v1356_v54, %v1355_v58 }
  0xa3   :  { %v2186_v51 = vunpack.i.h.bf16 %v2184_v45  ;;  %v2185_v52 = vunpack.i.l.bf16 %v2184_v45 }
  0xa4   :  { %v404_v61 = vsel %vm402_vm6, %v2190_v50, %v2191_v49 }
  0xa5   :  { %v406_v59 = vsel %vm402_vm6, %v2185_v52, %v2186_v51 }
  0xa6   :  { %569 = vmatpush.msra.mxu2 %v406_v59 }
  0xa7   :  { %2258 = vrot.lane.b32.xlu1 %v3894_v8, %s2753_s30 }
  0xa8   :  { %2268 = vrot.lane.b32.xlu0 %v2267_v4, %s2756_s12  ;;  %2273 = vrot.lane.b32.xlu2 %v2272_v2, %s2760_s15  ;;  %v1264_v4 = vmul.f32 %v2985_v29, %v2906_v46 }
  0xa9   :  { %v2194_v56 = vpop.permute.xlu1 %2193  ;;  %570 = vmatpush.msra.mxu2 %v404_v61 }
  0xaa   :  { %v2195_v60 = vunpack.i.l.bf16 %v2194_v56  ;;  %v2196_v2 = vunpack.i.h.bf16 %v2194_v56 }
  0xac   :  { %v405_v1 = vsel %vm402_vm6, %v2195_v60, %v2185_v52  ;;  %v403_v14 = vsel %vm402_vm6, %v2196_v2, %v2190_v50 }
  0xad   :  { %523 = vmatpush.msra.mxu0 %v405_v1 }
  0xaf   :  { %2293 = vrot.lane.b32.xlu1 %v2292_v17, %s2760_s15  ;;  %524 = vmatpush.msra.mxu0 %v403_v14  ;;  %v2344_v17 = vpack.i.bf16 %v1264_v4, %v2863_v24 }
  0xb0   :  { %2283 = vrot.lane.b32.xlu2 %v2282_v18, %s2759_s14  ;;  %2278 = vrot.lane.b32.xlu0 %v2277_v19, %s2760_s15  ;;  %v2339_v18 = vpack.i.bf16 %v1311_v13, %v1310_v11  ;;  %v3039_v19 = vpop.permute.xlu2 %2198 }
  0xb7   :  { %509 = vperm.xlu1 %2303, %v2979_v23  }
  0xb8   :  { %2298 = vrot.lane.b32.xlu2 %v2297_v25, %s2759_s14  ;;  %2288 = vrot.lane.b32.xlu0 %v2287_v28, %s2759_s14 }
  0xbf   :  { %2305 = vrot.lane.b32.xlu1 %v2304_v31, %s2761_s16 }
  0xc0   :  { %2310 = vrot.lane.b32.xlu2 %v2309_v36, %s2761_s16  ;;  %514 = vperm.xlu0 %2302, %v3000_v38   ;;  %v3044_v36 = vpop.permute.xlu0 %2203 }
  0xc7   :  { %2335 = vrot.lane.b32.xlu1 %v2334_v44, %s2757_s13 }
  0xc8   :  { %2315 = vrot.lane.b32.xlu2 %v3894_v8, %s2761_s16  ;;  %2320 = vrot.lane.b32.xlu0 %v3011_v48, %s2758_s5 }
  0xd0   :  { %2330 = vrot.lane.b32.xlu2 %v2329_v62, %s2758_s5  ;;  %2325 = vrot.lane.b32.xlu0 %v2324_v63, %s2758_s5 }
  0xd8   :  { %2345 = vrot.lane.b32.xlu2 %v2344_v17, %s2755_s11  ;;  %2340 = vrot.lane.b32.xlu0 %v2339_v18, %s2757_s13 }
  0xe0   :  { %v2214_v20 = vpop.permute.xlu2 %2213 }
  0xe1   :  { %v2215_v56 = vunpack.i.l.bf16 %v2214_v20  ;;  %v2216_v63 = vunpack.i.h.bf16 %v2214_v20 }
  0xea   :  { %v2229_v21 = vpop.permute.xlu2 %2228 }
  0xeb   :  { %v2231_v22 = vunpack.i.h.bf16 %v2229_v21  ;;  %v2230_v25 = vunpack.i.l.bf16 %v2229_v21 }
  0xed   :  { %v369_v28 = vsel %vm176_vm3, %v2230_v25, %v2231_v22 }
  0xee   :  { %571 = vmatpush.msra.mxu2 %v369_v28 }
  0xf2   :  { %v2239_v31 = vpop.permute.xlu2 %2238 }
  0xf3   :  { %v2241_v49 = vunpack.i.h.bf16 %v2239_v31  ;;  %v2240_v52 = vunpack.i.l.bf16 %v2239_v31 }
  0xf5   :  { %v318_v60 = vsel %vm228_vm2, %v2215_v56, %v2240_v52  ;;  %v319_v61 = vsel %vm228_vm2, %v2240_v52, %v2241_v49 }
  0xf9   :  { %v2209_v39 = vpop.permute.xlu1 %2208 }
  0xfa   :  { %v2210_v40 = vunpack.i.l.bf16 %v2209_v39  ;;  %v3046_v43 = vpop.permute.xlu2 %2263  ;;  %v2211_v53 = vunpack.i.h.bf16 %v2209_v39 }
  0xfc   :  { %v368_v44 = vsel %vm176_vm3, %v2210_v40, %v2230_v25 }
  0xfd   :  { %525 = vmatpush.msra.mxu0 %v368_v44 }
 0x101   :  { %v2219_v45 = vpop.permute.xlu1 %2218 }
 0x102   :  { %v3049_v50 = vpop.permute.xlu2 %2273  ;;  %v2234_v51 = vpop.permute.xlu0 %2233  ;;  %v2220_v22 = vunpack.i.l.bf16 %v2219_v45  ;;  %v2221_v49 = vunpack.i.h.bf16 %v2219_v45 }
 0x103   :  { %v2236_v54 = vunpack.i.h.bf16 %v2234_v51  ;;  %v2235_v27 = vunpack.i.l.bf16 %v2234_v51 }
 0x105   :  { %v366_v58 = vsel %vm176_vm3, %v2211_v53, %v2235_v27  ;;  %v367_v59 = vsel %vm176_vm3, %v2235_v27, %v2236_v54  ;;  %v2266_v54 = vunpack.i.h.bf16 %v3046_v43 }
 0x106   :  { %526 = vmatpush.msra.mxu0 %v366_v58  ;;  %572 = vmatpush.msra.mxu2 %v367_v59  ;;  %v2201_v58 = vunpack.i.h.bf16 %v3039_v19  ;;  %v2200_v59 = vunpack.i.l.bf16 %v3039_v19  ;;  %v2276_v19 = vunpack.i.h.bf16 %v3049_v50 }
 0x108   :  { %527 = vmatpush.msra.mxu0 %v318_v60  ;;  %573 = vmatpush.msra.mxu2 %v319_v61 }
 0x109   :  { %v2224_v62 = vpop.permute.xlu1 %2223 }
 0x10a   :  { %v2284_v1 = vpop.permute.xlu2 %2283  ;;  %v2244_v2 = vpop.permute.xlu0 %2243  ;;  %v2225_v52 = vunpack.i.l.bf16 %v2224_v62  ;;  %v2226_v61 = vunpack.i.h.bf16 %v2224_v62  ;;  %v2275_v62 = vunpack.i.l.bf16 %v3049_v50 }
 0x10b   :  { %v2286_v4 = vunpack.i.h.bf16 %v2284_v1  ;;  %v2285_v11 = vunpack.i.l.bf16 %v2284_v1  ;;  %v2246_v13 = vunpack.i.h.bf16 %v2244_v2  ;;  %v2245_v14 = vunpack.i.l.bf16 %v2244_v2 }
 0x10c   :  { %v117_v50 = vsel %vm113_vm5, %v2275_v62, %v2276_v19 }
 0x10d   :  { %v316_v17 = vsel %vm228_vm2, %v2216_v63, %v2245_v14  ;;  %v317_v18 = vsel %vm228_vm2, %v2245_v14, %v2246_v13  ;;  %v456_v21 = vsel %vm84_vm4, %v2285_v11, %v2286_v4  ;;  %v2206_v4 = vunpack.i.h.bf16 %v3044_v36 }
 0x10e   :  { %528 = vmatpush.msra.mxu0 %v316_v17  ;;  %574 = vmatpush.msra.mxu2 %v317_v18 }
 0x10f   :  { %606 = vmatpush.msra.mxu3 %v456_v21  ;;  %v154_v21 = vsel %vm150_vm7, %v2200_v59, %v2201_v58 }
 0x110   :  { %529 = vmatpush.msra.mxu0 %v2836_v10  ;;  %575 = vmatpush.msra.mxu2 %v2832_v7 }
 0x111   :  { %v2254_v20 = vpop.permute.xlu1 %2253 }
 0x112   :  { %v3060_v25 = vpop.permute.xlu2 %2298  ;;  %v2249_v28 = vpop.permute.xlu0 %2248  ;;  %530 = vmatpush.msra.mxu0 %v2842_v12  ;;  %576 = vmatpush.msra.mxu2 %v2830_v6  ;;  %v2255_v31 = vunpack.i.l.bf16 %v2254_v20  ;;  %v2256_v51 = vunpack.i.h.bf16 %v2254_v20  ;;  %v2265_v12 = vunpack.i.l.bf16 %v3046_v43 }
 0x113   :  { %v2300_v39 = vunpack.i.l.bf16 %v3060_v25  ;;  %v2251_v40 = vunpack.i.h.bf16 %v2249_v28  ;;  %v2250_v44 = vunpack.i.l.bf16 %v2249_v28 }
 0x114   :  { %v258_v6 = vsel %vm257_vm1, %v2221_v49, %v2255_v31  ;;  %v259_v45 = vsel %vm257_vm1, %v2255_v31, %v2256_v51  ;;  %v208_v56 = vsel %vm205_vm0, %v2225_v52, %v2265_v12  ;;  %v209_v43 = vsel %vm205_vm0, %v2265_v12, %v2266_v54  ;;  %v3093_v52 = vld [vmem:[%s3888_s1] sm:$0xff] }
 0x115   :  { %v260_v10 = vsel %vm257_vm1, %v2220_v22, %v2250_v44  ;;  %v455_v7 = vsel %vm84_vm4, %v2300_v39, %v2285_v11  ;;  %v261_v53 = vsel %vm257_vm1, %v2250_v44, %v2251_v40  ;;  %v2205_v11 = vunpack.i.l.bf16 %v3044_v36 }
 0x116   :  { %531 = vmatpush.msra.mxu0 %v260_v10  ;;  %560 = vmatpush.msra.mxu1 %v455_v7  ;;  %v2301_v12 = vunpack.i.h.bf16 %v3060_v25 }
 0x117   :  { %577 = vmatpush.msra.mxu2 %v261_v53  ;;  %v152_v22 = vsel %vm150_vm7, %v2205_v11, %v2206_v4  ;;  %v3133_v4 = vld [vmem:[%s3888_s1 + $0x18] sm:$0xff] }
 0x118   :  { %532 = vmatpush.msra.mxu0 %v258_v6 }
 0x119   :  { %578 = vmatpush.msra.mxu2 %v259_v45  ;;  %v2259_v27 = vpop.permute.xlu1 %2258 }
 0x11a   :  { %v2269_v60 = vpop.permute.xlu0 %2268  ;;  %533 = vmatpush.msra.mxu0 %v208_v56  ;;  %v2260_v63 = vunpack.i.l.bf16 %v2259_v27  ;;  %v2261_v13 = vunpack.i.h.bf16 %v2259_v27  ;;  %v3087_v49 = vpop.permute.xlu2 %2310  ;;  %v3105_v27 = vld [vmem:[%s3888_s1 + $0x8] sm:$0xff] }
 0x11b   :  { %v2271_v1 = vunpack.i.h.bf16 %v2269_v60  ;;  %v2270_v2 = vunpack.i.l.bf16 %v2269_v60  ;;  %579 = vmatpush.msra.mxu2 %v209_v43  ;;  %v3900_v25 = vunpack.i.h.bf16 %v3087_v49  ;;  %v2312_v43 = vunpack.i.l.bf16 %v3087_v49 }
 0x11c   :  { %v153_v18 = vsel %vm150_vm7, %v2260_v63, %v2200_v59  ;;  %v151_v36 = vsel %vm150_vm7, %v2261_v13, %v2205_v11  ;;  %v3112_v59 = vld [vmem:[%s3888_s1 + $0x10] sm:$0xff] }
 0x11d   :  { %v206_v14 = vsel %vm205_vm0, %v2226_v61, %v2270_v2  ;;  %v207_v17 = vsel %vm205_vm0, %v2270_v2, %v2271_v1  ;;  %v1412_v13 = vsel %vm402_vm6, %v2312_v43, %v3900_v25 }
 0x11e   :  { %534 = vmatpush.msra.mxu0 %v206_v14  ;;  %580 = vmatpush.msra.mxu2 %v207_v17 }
 0x120   :  { %535 = vmatpush.msra.mxu0 %v153_v18  ;;  %581 = vmatpush.msra.mxu2 %v154_v21 }
 0x121   :  { %v2294_v20 = vpop.permute.xlu1 %2293 }
 0x122   :  { %v2296_v28 = vunpack.i.h.bf16 %v2294_v20  ;;  %v2295_v31 = vunpack.i.l.bf16 %v2294_v20  ;;  %v2279_v39 = vpop.permute.xlu0 %2278  ;;  %536 = vmatpush.msra.mxu0 %v151_v36  ;;  %582 = vmatpush.msra.mxu2 %v152_v22  ;;  %v3114_v60 = vpop.permute.xlu2 %2315 }
 0x123   :  { %v2281_v40 = vunpack.i.h.bf16 %v2279_v39  ;;  %v2280_v44 = vunpack.i.l.bf16 %v2279_v39 }
 0x124   :  { %583 = vmatpush.msra.mxu2 %v117_v50  ;;  %v116_v51 = vsel %vm113_vm5, %v2295_v31, %v2275_v62 }
 0x125   :  { %537 = vmatpush.msra.mxu0 %v116_v51  ;;  %v115_v10 = vsel %vm113_vm5, %v2280_v44, %v2281_v40  ;;  %v114_v7 = vsel %vm113_vm5, %v2296_v28, %v2280_v44 }
 0x126   :  { %584 = vmatpush.msra.mxu2 %v115_v10 }
 0x127   :  { %538 = vmatpush.msra.mxu0 %v114_v7  ;;  %585 = vmatmul.f32.vlgmr.msra.gmra.mxu2 %v3093_v52 }
 0x128   :  { %539 = vmatmul.f32.vlgmr.msra.gmra.mxu0 %v3093_v52 }
 0x129   :  { %v3099_v53 = vpop.permute.xlu1 %509 }
 0x12a   :  { %v2289_v54 = vpop.permute.xlu0 %2288  ;;  %v2331_v14 = vpop.permute.xlu2 %2330 }
 0x12b   :  { %v2291_v6 = vunpack.i.h.bf16 %v2289_v54  ;;  %v2290_v45 = vunpack.i.l.bf16 %v2289_v54  ;;  %v2333_v19 = vunpack.i.h.bf16 %v2331_v14  ;;  %v2332_v36 = vunpack.i.l.bf16 %v2331_v14 }
 0x12d   :  { %v453_v56 = vsel %vm84_vm4, %v2301_v12, %v2290_v45  ;;  %v454_v58 = vsel %vm84_vm4, %v2290_v45, %v2291_v6  ;;  %v1376_v51 = vsel %vm176_vm3, %v2332_v36, %v2333_v19 }
 0x12e   :  { %561 = vmatpush.msra.mxu1 %v453_v56  ;;  %607 = vmatpush.msra.mxu3 %v454_v58 }
 0x12f   :  { %2148 = vmatmul.msk.f32.vlgmr.msra.gmra.mxu1 %vm150_vm7, %v3105_v27  ;;  %2150 = vmatmul.msk.f32.vlgmr.msra.gmra.mxu3 %vm150_vm7, %v3105_v27 }
 0x130   :  { %542 = vmatmul.f32.gmra.mxu0 %v3112_v59  ;;  %588 = vmatmul.f32.gmra.mxu2 %v3112_v59 }
 0x131   :  { %v3124_v61 = vpop.permute.xlu1 %2305 }
 0x132   :  { %v3901_v63 = vunpack.i.h.bf16 %v3124_v61  ;;  %v2307_v1 = vunpack.i.l.bf16 %v3124_v61  ;;  %v3128_v2 = vpop.permute.xlu0 %514  ;;  %v3164_v6 = vpop.permute.xlu2 %2345 }
 0x133   :  { %v3897_v56 = vunpack.i.h.bf16 %v3164_v6  ;;  %v2347_v58 = vunpack.i.l.bf16 %v3164_v6 }
 0x134   :  { %v1414_v11 = vsel %vm402_vm6, %v2307_v1, %v3901_v63 }
 0x135   :  { %1524 = vmatpush.msrb.mxu2 %v1414_v11  ;;  %v1286_v43 = vsel %vm257_vm1, %v2347_v58, %v3897_v56 }
 0x137   :  { %2149 = vmatmul.msk.f32.gmra.mxu1 %vm150_vm7, %v3133_v4  ;;  %2151 = vmatmul.msk.f32.gmra.mxu3 %vm150_vm7, %v3133_v4 }
 0x138   :  { %1525 = vmatpush.msrb.mxu2 %v1412_v13 }
 0x139   :  { %v3148_v21 = vpop.permute.xlu1 %2335 }
 0x13a   :  { %v2321_v17 = vpop.permute.xlu0 %2320  ;;  %v3899_v39 = vunpack.i.h.bf16 %v3148_v21  ;;  %v2337_v40 = vunpack.i.l.bf16 %v3148_v21 }
 0x13b   :  { %v2323_v62 = vunpack.i.h.bf16 %v2321_v17  ;;  %v2322_v22 = vunpack.i.l.bf16 %v2321_v17 }
 0x13c   :  { %v1336_v10 = vsel %vm228_vm2, %v2337_v40, %v3899_v39 }
 0x13d   :  { %v3146_v18 = vsel %vm176_vm3, %v2333_v19, %v2323_v62 }
 0x142   :  { %v2326_v20 = vpop.permute.xlu0 %2325 }
 0x143   :  { %v2328_v28 = vunpack.i.h.bf16 %v2326_v20  ;;  %v2327_v31 = vunpack.i.l.bf16 %v2326_v20 }
 0x145   :  { %v1378_v44 = vsel %vm176_vm3, %v2327_v31, %v2328_v28  ;;  %v3154_v50 = vsel %vm176_vm3, %v2328_v28, %v2322_v22 }
 0x146   :  { %1526 = vmatpush.msrb.mxu2 %v1378_v44 }
 0x148   :  { %1527 = vmatpush.msrb.mxu2 %v1376_v51 }
 0x14a   :  { %v3160_v7 = vpop.permute.xlu0 %2340  ;;  %1528 = vmatpush.msrb.mxu2 %v1336_v10 }
 0x14b   :  { %v3898_v54 = vunpack.i.h.bf16 %v3160_v7  ;;  %v2342_v12 = vunpack.i.l.bf16 %v3160_v7 }
 0x14d   :  { %v1334_v45 = vsel %vm228_vm2, %v2342_v12, %v3898_v54 }
 0x14e   :  { %1529 = vmatpush.msrb.mxu2 %v1334_v45 }
 0x150   :  { %1530 = vmatpush.msrb.mxu2 %v2985_v29 }
 0x152   :  { %1531 = vmatpush.msrb.mxu2 %v2991_v32 }
 0x154   :  { %1532 = vmatpush.msrb.mxu2 %v1286_v43 }
 0x1a5   :  { %v540_v1 = vpop.f32.mrf.mxu0 }
 0x1a6   :  { %v541_v11 = vadd.f32 %v540_v1, %v3099_v53 }
 0x1aa   :  { %v586_v17 = vpop.f32.mrf.mxu2 }
 0x1ab   :  { %v587_v20 = vadd.f32 %v586_v17, %v3099_v53 }
 0x1ac   :  { %v563_v13 = vpop.f32.mrf.mxu1 }
 0x1ad   :  { %v564_v14 = vadd.f32 %v563_v13, %v541_v11  ;;  %v543_v19 = vpop.f32.mrf.mxu0 }
 0x1ae   :  { %v544_v22 = vadd.f32 %v543_v19, %v3128_v2 }
 0x1af   :  { %v615_v62 = vmax.f32 %v564_v14, 0.0 }
 0x1b1   :  { %v3178_v36 = vmin.f32 %v615_v62, 6.0 }
 0x1b2   :  { %v609_v28 = vpop.f32.mrf.mxu3 }
 0x1b3   :  { %v610_v31 = vadd.f32 %v609_v28, %v587_v20  ;;  %v2349_v40 = vpack.i.bf16 %v3178_v36, %v3894_v8  ;;  %v754_v44 = vmul.f32 %v3178_v36, %v2906_v46  ;;  %v634_v51 = vmul.f32 %v3178_v36, %v2931_v57  ;;  %v589_v43 = vpop.f32.mrf.mxu2 }
 0x1b4   :  { %v566_v10 = vpop.f32.mrf.mxu1  ;;  %v712_v11 = vmul.f32 %v3178_v36, %v2911_v47  ;;  %v590_v14 = vadd.f32 %v589_v43, %v3128_v2  ;;  %v803_v20 = vmul.f32 %v3178_v36, %v2851_v15 }
 0x1b5   :  { %v616_v12 = vmax.f32 %v610_v31, 0.0  ;;  %v567_v45 = vadd.f32 %v566_v10, %v544_v22  ;;  %2350 = vrot.lane.b32.xlu1 %v2349_v40, %s2753_s30  ;;  %v2359_v53 = vpack.i.bf16 %v754_v44, %v2863_v24  ;;  %v2354_v58 = vpack.i.bf16 %v634_v51, %v2950_v5 }
 0x1b6   :  { %v2364_v62 = vpack.i.bf16 %v712_v11, %v2896_v41  ;;  %v845_v51 = vmul.f32 %v3178_v36, %v2853_v16 }
 0x1b7   :  { %v3190_v1 = vmin.f32 %v616_v12, 6.0  ;;  %2360 = vrot.lane.b32.xlu0 %v2359_v53, %s2755_s11  ;;  %2355 = vrot.lane.b32.xlu2 %v2354_v58, %s2760_s15  ;;  %v617_v13 = vmax.f32 %v567_v45, 0.0 }
 0x1b9   :  { %v804_v17 = vmul.f32 %v3190_v1, %v2883_v34  ;;  %v3202_v22 = vmin.f32 %v617_v13, 6.0  ;;  %v2369_v40 = vpack.i.bf16 %v3190_v1, %v3178_v36  ;;  %v846_v2 = vmul.f32 %v3190_v1, %v2869_v26 }
 0x1ba   :  { %v612_v19 = vpop.f32.mrf.mxu3 }
 0x1bb   :  { %v613_v28 = vadd.f32 %v612_v19, %v590_v14  ;;  %v2379_v31 = vpack.i.bf16 %v804_v17, %v803_v20  ;;  %v715_v10 = vmul.f32 %v3202_v22, %v2911_v47  ;;  %v2374_v12 = vpack.i.bf16 %v846_v2, %v845_v51 }
 0x1bc   :  { %v2384_v45 = vpack.i.bf16 %v3202_v22, %v3894_v8  ;;  %v757_v43 = vmul.f32 %v3202_v22, %v2906_v46  ;;  %v848_v17 = vmul.f32 %v3202_v22, %v2853_v16  ;;  %v806_v19 = vmul.f32 %v3202_v22, %v2851_v15 }
 0x1bd   :  { %2365 = vrot.lane.b32.xlu1 %v2364_v62, %s2756_s12  ;;  %v618_v44 = vmax.f32 %v613_v28, 0.0  ;;  %v2394_v58 = vpack.i.bf16 %v715_v10, %v2896_v41  ;;  %v1222_v28 = vmul.f32 %v2985_v29, %v2911_v47  ;;  %v637_v51 = vmul.f32 %v3202_v22, %v2931_v57 }
 0x1be   :  { %v2389_v14 = vpack.i.bf16 %v757_v43, %v2863_v24  ;;  %v1219_v10 = vmul.f32 %v2991_v32, %v2911_v47 }
 0x1bf   :  { %2380 = vrot.lane.b32.xlu0 %v2379_v31, %s2757_s13  ;;  %2370 = vrot.lane.b32.xlu2 %v2369_v40, %s2761_s16  ;;  %v3217_v53 = vmin.f32 %v618_v44, 6.0  ;;  %v1261_v31 = vmul.f32 %v2991_v32, %v2906_v46  ;;  %v2424_v2 = vpack.i.bf16 %v1222_v28, %v2896_v41 }
 0x1c1   :  { %v849_v11 = vmul.f32 %v3217_v53, %v2869_v26  ;;  %v807_v13 = vmul.f32 %v3217_v53, %v2883_v34  ;;  %v2399_v40 = vpack.i.bf16 %v3217_v53, %v3202_v22  ;;  %v2419_v44 = vpack.i.bf16 %v1261_v31, %v2863_v24 }
 0x1c2   :  { %v927_v43 = vmul.f32 %v3217_v53, %v2948_v3 }
 0x1c3   :  { %v2409_v62 = vpack.i.bf16 %v849_v11, %v848_v17  ;;  %v2414_v20 = vpack.i.bf16 %v807_v13, %v806_v19  ;;  %v924_v11 = vmul.f32 %v3190_v1, %v2948_v3  ;;  %v2429_v13 = vpack.i.bf16 %v2890_v37, %v2890_v37 }
 0x1c4   :  { %v2439_v19 = vpack.i.bf16 %v2985_v29, %v3894_v8  ;;  %v1265_v37 = vmul.f32 %v2987_v30, %v2886_v35 }
 0x1c5   :  { %2375 = vrot.lane.b32.xlu1 %v2374_v12, %s2758_s5  ;;  %v2404_v12 = vpack.i.bf16 %v637_v51, %v2950_v5  ;;  %v2444_v17 = vpack.i.bf16 %v2956_v9, %v924_v11 }
 0x1c7   :  { %2385 = vrot.lane.b32.xlu0 %v2384_v45, %s2753_s30  ;;  %2395 = vrot.lane.b32.xlu2 %v2394_v58, %s2756_s12  ;;  %v2449_v45 = vpack.i.bf16 %v2991_v32, %v3894_v8  ;;  %v2434_v58 = vpack.i.bf16 %v1219_v10, %v2896_v41  ;;  %v2484_v10 = vpack.i.bf16 %v2993_v33, %v2987_v30 }
 0x1cd   :  { %2390 = vrot.lane.b32.xlu1 %v2389_v14, %s2755_s11  ;;  %v2464_v14 = vpack.i.bf16 %v2956_v9, %v927_v43  ;;  %v1145_v43 = vmul.f32 %v2987_v30, %v2927_v55 }
 0x1cf   :  { %2410 = vrot.lane.b32.xlu0 %v2409_v62, %s2758_s5  ;;  %2415 = vrot.lane.b32.xlu2 %v2414_v20, %s2757_s13  ;;  %v1141_v62 = vmul.f32 %v2991_v32, %v2931_v57  ;;  %v1262_v20 = vmul.f32 %v2993_v33, %v2886_v35 }
 0x1d1   :  { %v2469_v28 = vpack.i.bf16 %v1141_v62, %v2950_v5  ;;  %v2459_v31 = vpack.i.bf16 %v1262_v20, %v1265_v37  ;;  %v1431_v62 = vmul.f32 %v2993_v33, %v2948_v3  ;;  %v923_v20 = vmul.f32 %v3178_v36, %v2944_v0 }
 0x1d5   :  { %2400 = vrot.lane.b32.xlu1 %v2399_v40, %s2761_s16  ;;  %v1144_v40 = vmul.f32 %v2985_v29, %v2931_v57 }
 0x1d7   :  { %2425 = vrot.lane.b32.xlu0 %v2424_v2, %s2756_s12  ;;  %2420 = vrot.lane.b32.xlu2 %v2419_v44, %s2755_s11  ;;  %v1433_v2 = vmul.f32 %v2985_v29, %v2944_v0  ;;  %v1434_v44 = vmul.f32 %v2987_v30, %v2948_v3  ;;  %v2454_v51 = vpack.i.bf16 %v1144_v40, %v2950_v5 }
 0x1d8   :  { %v1223_v29 = vmul.f32 %v2987_v30, %v2898_v42 }
 0x1dd   :  { %2405 = vrot.lane.b32.xlu1 %v2404_v12, %s2760_s15  ;;  %v2479_v12 = vpack.i.bf16 %v1434_v44, %v1433_v2  ;;  %v758_v44 = vmul.f32 %v3217_v53, %v2886_v35 }
 0x1df   :  { %2450 = vrot.lane.b32.xlu0 %v2449_v45, %s2753_s30  ;;  %2435 = vrot.lane.b32.xlu2 %v2434_v58, %s2756_s12  ;;  %v1220_v45 = vmul.f32 %v2993_v33, %v2898_v42  ;;  %v1142_v58 = vmul.f32 %v2993_v33, %v2927_v55 }
 0x1e1   :  { %v2474_v11 = vpack.i.bf16 %v1220_v45, %v1223_v29 }
 0x1e5   :  { %2430 = vrot.lane.b32.xlu1 %v2429_v13, %s2757_s13 }
 0x1e7   :  { %2465 = vrot.lane.b32.xlu0 %v2464_v14, %s2759_s14  ;;  %2445 = vrot.lane.b32.xlu2 %v2444_v17, %s2759_s14  ;;  %v3305_v14 = vpack.i.bf16 %v2956_v9, %v2956_v9  ;;  %v2494_v17 = vpack.i.bf16 %v1142_v58, %v1145_v43  ;;  %v926_v9 = vmul.f32 %v3202_v22, %v2944_v0 }
 0x1e8   :  { %v716_v43 = vmul.f32 %v3217_v53, %v2898_v42 }
 0x1ed   :  { %2440 = vrot.lane.b32.xlu1 %v2439_v19, %s2753_s30  ;;  %v1430_v19 = vmul.f32 %v2991_v32, %v2944_v0  ;;  %v2520_v32 = vpack.i.bf16 %v923_v20, %v926_v9  ;;  %v635_v20 = vmul.f32 %v3190_v1, %v2927_v55 }
 0x1ef   :  { %2470 = vrot.lane.b32.xlu0 %v2469_v28, %s2760_s15  ;;  %2460 = vrot.lane.b32.xlu2 %v2459_v31, %s2755_s11  ;;  %v2489_v30 = vpack.i.bf16 %v1431_v62, %v1430_v19 }
 0x1f5   :  { %2455 = vrot.lane.b32.xlu1 %v2454_v51, %s2760_s15 }
 0x1f7   :  { %2485 = vrot.lane.b32.xlu0 %v2484_v10, %s2753_s30  ;;  %2480 = vrot.lane.b32.xlu2 %v2479_v12, %s2759_s14 }
 0x1fd   :  { %2475 = vrot.lane.b32.xlu1 %v2474_v11, %s2756_s12 }
 0x1ff   :  { %2500 = vrot.lane.b32.xlu0 %v3305_v14, %s2759_s14  ;;  %2495 = vrot.lane.b32.xlu2 %v2494_v17, %s2760_s15  ;;  %v713_v17 = vmul.f32 %v3190_v1, %v2898_v42 }
 0x201   :  { %v2550_v19 = vpack.i.bf16 %v713_v17, %v716_v43 }
 0x205   :  { %2490 = vrot.lane.b32.xlu1 %v2489_v30, %s2759_s14  ;;  %v638_v30 = vmul.f32 %v3217_v53, %v2927_v55  ;;  %v2318_v55 = vunpack.i.h.bf16 %v3114_v60 }
 0x207   :  { %2506 = vrot.lane.b32.xlu0 %v3894_v8, %s2761_s16  ;;  %1510 = vperm.xlu2 %2504, %v2979_v23   ;;  %v2525_v23 = vpack.i.bf16 %v3190_v1, %v3217_v53 }
 0x20d   :  { %1515 = vperm.xlu1 %2303, %v3000_v38  }
 0x20f   :  { %2521 = vrot.lane.b32.xlu0 %v2520_v32, %s2759_s14  ;;  %2516 = vrot.lane.b32.xlu2 %v2429_v13, %s2757_s13  ;;  %v2555_v32 = vpack.i.bf16 %v635_v20, %v638_v30 }
 0x211   :  { %v3325_v33 = vpop.permute.xlu2 %2355 }
 0x215   :  { %2511 = vrot.lane.b32.xlu1 %v3011_v48, %s2758_s5 }
 0x219   :  { %v3329_v37 = vpop.permute.xlu2 %2370 }
 0x21d   :  { %2526 = vrot.lane.b32.xlu1 %v2525_v23, %s2753_s30 }
 0x221   :  { %v3334_v28 = vpop.permute.xlu2 %2395 }
 0x225   :  { %2536 = vrot.lane.b32.xlu1 %v3011_v48, %s2758_s5  ;;  %v755_v48 = vmul.f32 %v3190_v1, %v2886_v35 }
 0x227   :  { %v3338_v38 = vpop.permute.xlu1 %2350  ;;  %v2545_v29 = vpack.i.bf16 %v755_v48, %v758_v44 }
 0x228   :  { %v2352_v34 = vunpack.i.l.bf16 %v3338_v38 }
 0x229   :  { %v3340_v31 = vpop.permute.xlu0 %2360  ;;  %v3342_v40 = vpop.permute.xlu2 %2415 }
 0x22a   :  { %v3932_v42 = vunpack.i.h.bf16 %v3340_v31 }
 0x22d   :  { %2541 = vrot.lane.b32.xlu1 %v2429_v13, %s2757_s13 }
 0x22f   :  { %v3345_v2 = vpop.permute.xlu1 %2365 }
 0x231   :  { %v3349_v51 = vpop.permute.xlu0 %2380  ;;  %v3351_v10 = vpop.permute.xlu2 %2420 }
 0x232   :  { %v3896_v12 = vunpack.i.h.bf16 %v3351_v10  ;;  %v2422_v45 = vunpack.i.l.bf16 %v3351_v10 }
 0x234   :  { %v1284_v13 = vsel %vm257_vm1, %v2422_v45, %v3896_v12 }
 0x235   :  { %2546 = vrot.lane.b32.xlu1 %v2545_v29, %s2755_s11  ;;  %1533 = vmatpush.msrb.mxu2 %v1284_v13  ;;  %v3904_v29 = vunpack.i.h.bf16 %v3329_v37  ;;  %v2372_v13 = vunpack.i.l.bf16 %v3329_v37 }
 0x237   :  { %v3361_v58 = vpop.permute.xlu1 %2375  ;;  %v905_v25 = vsel %vm402_vm6, %v2372_v13, %v3904_v29 }
 0x238   :  { %v3906_v54 = vunpack.i.h.bf16 %v3361_v58  ;;  %v2377_v39 = vunpack.i.l.bf16 %v3361_v58 }
 0x239   :  { %v3365_v11 = vpop.permute.xlu0 %2385  ;;  %v3378_v23 = vpop.permute.xlu2 %2435 }
 0x23a   :  { %v3909_v17 = vunpack.i.h.bf16 %v3378_v23 }
 0x23d   :  { %2551 = vrot.lane.b32.xlu1 %v2550_v19, %s2756_s12  ;;  %v2437_v19 = vunpack.i.l.bf16 %v3378_v23 }
 0x23f   :  { %v3370_v62 = vpop.permute.xlu1 %2390  ;;  %v1242_v63 = vsel %vm205_vm0, %v2437_v19, %v3909_v17  ;;  %v869_v19 = vsel %vm176_vm3, %v2377_v39, %v3906_v54  ;;  %v2397_v17 = vunpack.i.l.bf16 %v3334_v28 }
 0x241   :  { %v3374_v9 = vpop.permute.xlu0 %2410 }
 0x242   :  { %v2412_v8 = vunpack.i.l.bf16 %v3374_v9 }
 0x245   :  { %2556 = vrot.lane.b32.xlu1 %v2555_v32, %s2760_s15  ;;  %v3905_v32 = vunpack.i.h.bf16 %v3374_v9 }
 0x247   :  { %v3381_v44 = vpop.permute.xlu1 %2400 }
 0x248   :  { %v3902_v48 = vunpack.i.h.bf16 %v3381_v44  ;;  %v2402_v45 = vunpack.i.l.bf16 %v3381_v44 }
 0x249   :  { %v3387_v43 = vpop.permute.xlu0 %2425 }
 0x24a   :  { %v3903_v30 = vunpack.i.h.bf16 %v3387_v43  ;;  %v2427_v20 = vunpack.i.l.bf16 %v3387_v43  ;;  %v907_v12 = vsel %vm402_vm6, %v2402_v45, %v3902_v48  ;;  %v2417_v45 = vunpack.i.l.bf16 %v3342_v40  ;;  %v3411_v48 = vpop.permute.xlu2 %2445 }
 0x24b   :  { %1017 = vmatpush.msrb.mxu1 %v907_v12  ;;  %v3908_v12 = vunpack.i.h.bf16 %v3342_v40  ;;  %v3933_v15 = vunpack.i.l.bf16 %v3411_v48 }
 0x24c   :  { %v1244_v56 = vsel %vm205_vm0, %v2427_v20, %v3903_v30  ;;  %v871_v30 = vsel %vm176_vm3, %v2412_v8, %v3905_v32 }
 0x24d   :  { %1534 = vmatpush.msrb.mxu2 %v1244_v56  ;;  %1018 = vmatpush.msrb.mxu1 %v905_v25  ;;  %v3907_v25 = vunpack.i.h.bf16 %v3349_v51  ;;  %v2382_v56 = vunpack.i.l.bf16 %v3349_v51  ;;  %v829_v29 = vsel %vm228_vm2, %v2417_v45, %v3908_v12  ;;  %v2448_v45 = vunpack.i.h.bf16 %v3411_v48 }
 0x24f   :  { %v3413_v20 = vpop.permute.xlu1 %2405  ;;  %1535 = vmatpush.msrb.mxu2 %v1242_v63  ;;  %1019 = vmatpush.msrb.mxu1 %v871_v30  ;;  %v827_v8 = vsel %vm228_vm2, %v2382_v56, %v3907_v25  ;;  %v3918_v63 = vunpack.i.h.bf16 %v3370_v62  ;;  %v2392_v30 = vunpack.i.l.bf16 %v3370_v62 }
 0x251   :  { %v3420_v13 = vpop.permute.xlu0 %2450  ;;  %1020 = vmatpush.msrb.mxu1 %v869_v19  ;;  %v2362_v19 = vunpack.i.l.bf16 %v3340_v31  ;;  %v779_v39 = vsel %vm257_vm1, %v2392_v30, %v3918_v63  ;;  %v948_v30 = vsel %vm84_vm4, %v3933_v15, %v2448_v45 }
 0x252   :  { %v3438_v54 = vpop.permute.xlu2 %2460  ;;  %v2452_v15 = vunpack.i.l.bf16 %v3420_v13 }
 0x253   :  { %1021 = vmatpush.msrb.mxu1 %v829_v29  ;;  %v777_v12 = vsel %vm257_vm1, %v2362_v19, %v3932_v42  ;;  %v3935_v42 = vunpack.i.h.bf16 %v3124_v61  ;;  %v3923_v19 = vunpack.i.h.bf16 %v3420_v13  ;;  %v3936_v61 = vunpack.i.h.bf16 %v3345_v2 }
 0x255   :  { %1022 = vmatpush.msrb.mxu1 %v827_v8 }
 0x257   :  { %v3433_v32 = vpop.permute.xlu1 %2430  ;;  %1023 = vmatpush.msrb.mxu1 %v3202_v22  ;;  %v2317_v22 = vunpack.i.l.bf16 %v3114_v60  ;;  %v2387_v60 = vunpack.i.l.bf16 %v3365_v11 }
 0x259   :  { %v3440_v29 = vpop.permute.xlu0 %2465  ;;  %1024 = vmatpush.msrb.mxu1 %v3178_v36  ;;  %v2367_v36 = vunpack.i.l.bf16 %v3345_v2 }
 0x25a   :  { %v2468_v8 = vunpack.i.h.bf16 %v3440_v29  ;;  %v3919_v25 = vunpack.i.l.bf16 %v3440_v29 }
 0x25b   :  { %1025 = vmatpush.msrb.mxu1 %v779_v39  ;;  %v3465_v39 = vld [vmem:[#allocation7 + $0x8] sm:$0xff] }
 0x25c   :  { %v950_v56 = vsel %vm84_vm4, %v3919_v25, %v2468_v8  ;;  %v3934_v25 = vunpack.i.h.bf16 %v3334_v28  ;;  %v3498_v8 = vpop.permute.xlu2 %2480 }
 0x25d   :  { %1100 = vmatpush.msrb.mxu0 %v950_v56  ;;  %1026 = vmatpush.msrb.mxu1 %v777_v12  ;;  %v1415_v12 = vsel %vm402_vm6, %v3935_v42, %v2317_v22  ;;  %v3937_v22 = vunpack.i.h.bf16 %v3087_v49  ;;  %v3925_v42 = vunpack.i.h.bf16 %v3413_v20  ;;  %v3938_v49 = vunpack.i.h.bf16 %v3365_v11 }
 0x25e   :  { %v737_v35 = vsel %vm205_vm0, %v2397_v17, %v3934_v25  ;;  %v735_v25 = vsel %vm205_vm0, %v2367_v36, %v3936_v61  ;;  %v2432_v36 = vunpack.i.l.bf16 %v3433_v32  ;;  %v3924_v61 = vunpack.i.h.bf16 %v3325_v33 }
 0x25f   :  { %v3469_v63 = vpop.permute.xlu1 %2440  ;;  %1101 = vmatpush.msrb.mxu0 %v948_v30  ;;  %1027 = vmatpush.msrb.mxu1 %v737_v35  ;;  %v1413_v30 = vsel %vm402_vm6, %v3937_v22, %v2318_v55  ;;  %v695_v55 = vsel %vm150_vm7, %v2387_v60, %v3938_v49  ;;  %v2433_v22 = vunpack.i.h.bf16 %v3433_v32  ;;  %v2483_v60 = vunpack.i.h.bf16 %v3498_v8 }
 0x260   :  { %v3922_v45 = vunpack.i.h.bf16 %v3469_v63  ;;  %v2442_v56 = vunpack.i.l.bf16 %v3469_v63  ;;  %2154 = vmatmul.msk.f32.vlgmr.msrb.gmra.mxu0 %vm150_vm7, %v3465_v39  ;;  %v3940_v49 = vunpack.i.h.bf16 %v3148_v21 }
 0x261   :  { %1570 = vmatpush.msra.mxu0 %v1415_v12  ;;  %v3483_v17 = vpop.permute.xlu0 %2470  ;;  %1028 = vmatpush.msrb.mxu1 %v735_v25  ;;  %v2407_v12 = vunpack.i.l.bf16 %v3413_v20  ;;  %v2357_v25 = vunpack.i.l.bf16 %v3325_v33 }
 0x262   :  { %v1202_v35 = vsel %vm150_vm7, %v2442_v56, %v3922_v45  ;;  %v1200_v56 = vsel %vm150_vm7, %v2452_v15, %v3923_v19 }
 0x263   :  { %1571 = vmatpush.msra.mxu0 %v1413_v30  ;;  %1536 = vmatpush.msrb.mxu2 %v1202_v35  ;;  %v3939_v30 = vunpack.i.h.bf16 %v3338_v38  ;;  %v2482_v35 = vunpack.i.l.bf16 %v3498_v8  ;;  %v659_v32 = vsel %vm113_vm5, %v2407_v12, %v3925_v42  ;;  %v657_v19 = vsel %vm113_vm5, %v2357_v25, %v3924_v61 }
 0x264   :  { %1029 = vmatpush.msrb.mxu1 %v695_v55  ;;  %v3941_v12 = vunpack.i.h.bf16 %v3160_v7  ;;  %v2462_v25 = vunpack.i.l.bf16 %v3438_v54  ;;  %v3547_v7 = vld [vmem:[#allocation4 + $0x38] sm:$0xff]  ;;  %v3944_v61 = vunpack.i.h.bf16 %v3387_v43 }
 0x265   :  { %1572 = vmatpush.msra.mxu0 %v3154_v50  ;;  %v693_v45 = vsel %vm150_vm7, %v2352_v34, %v3939_v30  ;;  %1537 = vmatpush.msrb.mxu2 %v1200_v56  ;;  %v3517_v50 = vld [vmem:[#allocation7 + $0x18] sm:$0xff]  ;;  %v1337_v34 = vsel %vm228_vm2, %v3940_v49, %v2432_v36  ;;  %v3537_v36 = vld [vmem:[#allocation7] sm:$0xff] }
 0x266   :  { %1030 = vmatpush.msrb.mxu1 %v693_v45  ;;  %v2472_v45 = vunpack.i.l.bf16 %v3483_v17  ;;  %v1335_v21 = vsel %vm228_vm2, %v3941_v12, %v2433_v22  ;;  %v2463_v22 = vunpack.i.h.bf16 %v3438_v54  ;;  %v3943_v54 = vunpack.i.h.bf16 %v3351_v10 }
 0x267   :  { %1573 = vmatpush.msra.mxu0 %v3146_v18  ;;  %v3519_v15 = vpop.permute.xlu1 %2455  ;;  %v3926_v18 = vunpack.i.h.bf16 %v3483_v17 }
 0x268   :  { %v2458_v55 = vunpack.i.h.bf16 %v3519_v15  ;;  %v2457_v56 = vunpack.i.l.bf16 %v3519_v15  ;;  %1031 = vmatpush.msrb.mxu1 %v659_v32  ;;  %2155 = vmatmul.msk.f32.gmra.mxu0 %vm150_vm7, %v3517_v50  ;;  %v1456_v15 = vsel %vm84_vm4, %v2482_v35, %v2483_v60  ;;  %v3555_v35 = vld [vmem:[#allocation4 + $0x28] sm:$0xff] }
 0x269   :  { %1574 = vmatpush.msra.mxu0 %v1337_v34  ;;  %v2486_v30 = vpop.permute.xlu0 %2485 }
 0x26a   :  { %1032 = vmatpush.msrb.mxu1 %v657_v19  ;;  %v1166_v32 = vsel %vm113_vm5, %v2457_v56, %v2458_v55  ;;  %v1164_v19 = vsel %vm113_vm5, %v2472_v45, %v3926_v18  ;;  %v3942_v56 = vunpack.i.h.bf16 %v3164_v6  ;;  %v2487_v18 = vunpack.i.l.bf16 %v2486_v30 }
 0x26b   :  { %1575 = vmatpush.msra.mxu0 %v1335_v21  ;;  %1538 = vmatpush.msrb.mxu2 %v1166_v32  ;;  %v3561_v32 = vld [vmem:[#allocation7 + $0x10] sm:$0xff]  ;;  %v2488_v6 = vunpack.i.h.bf16 %v2486_v30 }
 0x26c   :  { %1561 = vmatpush.msra.mxu1 %v1456_v15  ;;  %v1287_v12 = vsel %vm257_vm1, %v3942_v56, %v2462_v25  ;;  %v3945_v25 = vunpack.i.h.bf16 %v3378_v23 }
 0x26d   :  { %1033 = vmatmul.f32.vlgmr.msrb.gmra.mxu1 %v3537_v36  ;;  %1576 = vmatpush.msra.mxu0 %v3547_v7 }
 0x26e   :  { %1539 = vmatpush.msrb.mxu2 %v1164_v19  ;;  %v1285_v19 = vsel %vm257_vm1, %v3943_v54, %v2463_v22 }
 0x26f   :  { %1540 = vmatmul.f32.vlgmr.msrb.gmra.mxu2 %v3093_v52  ;;  %1577 = vmatpush.msra.mxu0 %v3555_v35  ;;  %v2476_v49 = vpop.permute.xlu1 %2475 }
 0x270   :  { %2164 = vmatpush.msra.mxu2 %v1456_v15  ;;  %v2477_v34 = vunpack.i.l.bf16 %v2476_v49  ;;  %v2478_v45 = vunpack.i.h.bf16 %v2476_v49  ;;  %v2496_v15 = vpop.permute.xlu2 %2495 }
 0x271   :  { %1578 = vmatpush.msra.mxu0 %v1287_v12  ;;  %v2501_v21 = vpop.permute.xlu0 %2500  ;;  %v2497_v54 = vunpack.i.l.bf16 %v2496_v15 }
 0x272   :  { %v1245_v42 = vsel %vm205_vm0, %v3944_v61, %v2477_v34  ;;  %v1243_v56 = vsel %vm205_vm0, %v3945_v25, %v2478_v45  ;;  %v2502_v22 = vunpack.i.l.bf16 %v2501_v21  ;;  %v3946_v61 = vunpack.i.h.bf16 %v3469_v63 }
 0x273   :  { %1579 = vmatpush.msra.mxu0 %v1285_v19  ;;  %v2498_v45 = vunpack.i.h.bf16 %v2496_v15  ;;  %v1167_v63 = vsel %vm113_vm5, %v2458_v55, %v2497_v54  ;;  %v2503_v19 = vunpack.i.h.bf16 %v2501_v21 }
 0x274   :  { %v1203_v34 = vsel %vm150_vm7, %v3946_v61, %v2487_v18  ;;  %v1457_v18 = vsel %vm84_vm4, %v2483_v60, %v2502_v22 }
 0x275   :  { %1036 = vmatmul.f32.gmra.mxu1 %v3561_v32  ;;  %1580 = vmatpush.msra.mxu0 %v1245_v42  ;;  %v3947_v42 = vunpack.i.h.bf16 %v3420_v13 }
 0x277   :  { %1543 = vmatmul.f32.gmra.mxu2 %v3112_v59  ;;  %1581 = vmatpush.msra.mxu0 %v1243_v56  ;;  %v2491_v10 = vpop.permute.xlu1 %2490  ;;  %v1201_v23 = vsel %vm150_vm7, %v3947_v42, %v2488_v6  ;;  %v3948_v6 = vunpack.i.h.bf16 %v3483_v17  ;;  %v3949_v17 = vunpack.i.l.bf16 %v3440_v29  ;;  %v3952_v29 = vunpack.i.h.bf16 %v3329_v37 }
 0x278   :  { %v2493_v49 = vunpack.i.h.bf16 %v2491_v10  ;;  %v2492_v43 = vunpack.i.l.bf16 %v2491_v10  ;;  %v3587_v13 = vpop.permute.xlu2 %1510 }
 0x279   :  { %1582 = vmatpush.msra.mxu0 %v1203_v34  ;;  %v2507_v12 = vpop.permute.xlu0 %2506  ;;  %v1165_v25 = vsel %vm113_vm5, %v3948_v6, %v2498_v45 }
 0x27a   :  { %v1454_v30 = vsel %vm84_vm4, %v2492_v43, %v2493_v49  ;;  %v1455_v15 = vsel %vm84_vm4, %v2493_v49, %v2503_v19  ;;  %v2508_v56 = vunpack.i.l.bf16 %v2507_v12  ;;  %v2509_v22 = vunpack.i.h.bf16 %v2507_v12 }
 0x27b   :  { %1583 = vmatpush.msra.mxu0 %v1201_v23  ;;  %1562 = vmatpush.msra.mxu1 %v1454_v30  ;;  %v3950_v49 = vunpack.i.l.bf16 %v3411_v48  ;;  %v3953_v48 = vunpack.i.h.bf16 %v3374_v9  ;;  %v3956_v9 = vunpack.i.h.bf16 %v3349_v51 }
 0x27c   :  { %2165 = vmatpush.msra.mxu2 %v1454_v30  ;;  %v906_v12 = vsel %vm402_vm6, %v3952_v29, %v2509_v22  ;;  %v3954_v30 = vunpack.i.h.bf16 %v3361_v58  ;;  %v3965_v29 = vmov 0.0  }
 0x27d   :  { %2156 = vmatmul.msk.f32.vlgmr.msra.gmra.mxu1 %vm150_vm7, %v3105_v27  ;;  %1584 = vmatpush.msra.mxu0 %v1167_v63  ;;  %v3955_v63 = vunpack.i.h.bf16 %v3342_v40 }
 0x27e   :  { %1607 = vmatpush.msrb.mxu1 %v1457_v18  ;;  %2531 = vrot.lane.b32.xlu2 %v3965_v29, %s2761_s16 }
 0x27f   :  { %2157 = vmatmul.msk.f32.vlgmr.msra.gmra.mxu2 %vm150_vm7, %v3133_v4  ;;  %1585 = vmatpush.msra.mxu0 %v1165_v25  ;;  %v3595_v55 = vpop.permute.xlu1 %1515 }
 0x280   :  { %1608 = vmatpush.msrb.mxu1 %v1455_v15  ;;  %1586 = vmatmul.f32.vlgmr.msra.gmra.mxu0 %v3093_v52  ;;  %v3951_v52 = vunpack.i.h.bf16 %v3381_v44  ;;  %v2517_v54 = vpop.permute.xlu2 %2516  ;;  %v3957_v15 = vunpack.i.h.bf16 %v3370_v62  ;;  %v3960_v62 = vunpack.i.h.bf16 %v3345_v2 }
 0x281   :  { %v2522_v8 = vpop.permute.xlu0 %2521  ;;  %v2518_v23 = vunpack.i.l.bf16 %v2517_v54 }
 0x282   :  { %v2524_v60 = vunpack.i.h.bf16 %v2522_v8  ;;  %v2523_v21 = vunpack.i.l.bf16 %v2522_v8  ;;  %v908_v34 = vsel %vm402_vm6, %v3951_v52, %v2508_v56  ;;  %v3958_v8 = vunpack.i.h.bf16 %v3340_v31 }
 0x283   :  { %v830_v18 = vsel %vm228_vm2, %v3955_v63, %v2518_v23  ;;  %v3961_v31 = vunpack.i.h.bf16 %v3365_v11 }
 0x284   :  { %v949_v10 = vsel %vm84_vm4, %v2523_v21, %v3949_v17  ;;  %v947_v43 = vsel %vm84_vm4, %v2524_v60, %v3950_v49  ;;  %v3959_v17 = vunpack.i.h.bf16 %v3334_v28 }
 0x285   :  { %2158 = vmatmul.msk.f32.vlgmr.msrb.gmra.mxu1 %vm150_vm7, %v3105_v27  ;;  %1054 = vmatpush.msrb.mxu3 %v949_v10 }
 0x287   :  { %v2512_v61 = vpop.permute.xlu1 %2511  ;;  %1055 = vmatpush.msrb.mxu3 %v947_v43 }
 0x288   :  { %v2513_v42 = vunpack.i.l.bf16 %v2512_v61  ;;  %1589 = vmatmul.f32.gmra.mxu0 %v3112_v59  ;;  %v2514_v27 = vunpack.i.h.bf16 %v2512_v61  ;;  %2152 = vmatmul.msk.f32.vlgmr.msrb.gmra.mxu3 %vm150_vm7, %v3465_v39  ;;  %v2519_v59 = vunpack.i.h.bf16 %v2517_v54  ;;  %v3962_v54 = vunpack.i.h.bf16 %v3338_v38 }
 0x289   :  { %1063 = vmatpush.msra.mxu3 %v908_v34 }
 0x28a   :  { %v872_v44 = vsel %vm176_vm3, %v3953_v48, %v2513_v42  ;;  %v870_v37 = vsel %vm176_vm3, %v3954_v30, %v2514_v27  ;;  %v828_v19 = vsel %vm228_vm2, %v3956_v9, %v2519_v59  ;;  %v3963_v42 = vunpack.i.h.bf16 %v3413_v20 }
 0x28b   :  { %1064 = vmatpush.msra.mxu3 %v906_v12  ;;  %v3964_v27 = vunpack.i.h.bf16 %v3325_v33 }
 0x28d   :  { %1065 = vmatpush.msra.mxu3 %v872_v44  ;;  %2159 = vmatmul.msk.f32.gmra.mxu1 %vm150_vm7, %v3133_v4 }
 0x28f   :  { %1066 = vmatpush.msra.mxu3 %v870_v37  ;;  %v2527_v45 = vpop.permute.xlu1 %2526 }
 0x290   :  { %2153 = vmatmul.msk.f32.gmra.mxu3 %vm150_vm7, %v3517_v50  ;;  %v2528_v56 = vunpack.i.l.bf16 %v2527_v45  ;;  %v2529_v22 = vunpack.i.h.bf16 %v2527_v45 }
 0x291   :  { %1067 = vmatpush.msra.mxu3 %v830_v18 }
 0x292   :  { %v696_v43 = vsel %vm150_vm7, %v3961_v31, %v2528_v56  ;;  %v694_v28 = vsel %vm150_vm7, %v3962_v54, %v2529_v22 }
 0x293   :  { %1068 = vmatpush.msra.mxu3 %v828_v19 }
 0x295   :  { %1069 = vmatpush.msra.mxu3 %v3217_v53 }
 0x297   :  { %1070 = vmatpush.msra.mxu3 %v3190_v1  ;;  %v3633_v4 = vpop.permute.xlu1 %2536 }
 0x29f   :  { %v3635_v58 = vpop.permute.xlu1 %2541 }
 0x2a7   :  { %v2547_v40 = vpop.permute.xlu1 %2546 }
 0x2a8   :  { %v2549_v6 = vunpack.i.h.bf16 %v2547_v40  ;;  %v2548_v25 = vunpack.i.l.bf16 %v2547_v40 }
 0x2aa   :  { %v780_v51 = vsel %vm257_vm1, %v3957_v15, %v2548_v25  ;;  %v778_v60 = vsel %vm257_vm1, %v3958_v8, %v2549_v6 }
 0x2ab   :  { %1071 = vmatpush.msra.mxu3 %v780_v51 }
 0x2ad   :  { %1072 = vmatpush.msra.mxu3 %v778_v60 }
 0x2af   :  { %v2552_v53 = vpop.permute.xlu1 %2551 }
 0x2b0   :  { %v2554_v21 = vunpack.i.h.bf16 %v2552_v53  ;;  %v2553_v1 = vunpack.i.l.bf16 %v2552_v53 }
 0x2b2   :  { %v738_v10 = vsel %vm205_vm0, %v3959_v17, %v2553_v1  ;;  %v736_v49 = vsel %vm205_vm0, %v3960_v62, %v2554_v21 }
 0x2b3   :  { %1073 = vmatpush.msra.mxu3 %v738_v10 }
 0x2b5   :  { %1074 = vmatpush.msra.mxu3 %v736_v49 }
 0x2b7   :  { %v2557_v61 = vpop.permute.xlu1 %2556  ;;  %1075 = vmatpush.msra.mxu3 %v696_v43 }
 0x2b8   :  { %v2559_v52 = vunpack.i.h.bf16 %v2557_v61  ;;  %v2558_v34 = vunpack.i.l.bf16 %v2557_v61 }
 0x2b9   :  { %1076 = vmatpush.msra.mxu3 %v694_v28 }
 0x2ba   :  { %v660_v2 = vsel %vm113_vm5, %v3963_v42, %v2558_v34  ;;  %v658_v11 = vsel %vm113_vm5, %v3964_v27, %v2559_v52 }
 0x2bb   :  { %1077 = vmatpush.msra.mxu3 %v660_v2 }
 0x2bd   :  { %1078 = vmatpush.msra.mxu3 %v658_v11  ;;  %v3966_v11 = vld [vmem:[#allocation14_spill] sm:$0xff] }
 0x2be   :  { %1079 = vmatmul.f32.vlgmr.msra.gmra.mxu3 %v3537_v36 }
 0x2c6   :  { %1082 = vmatmul.f32.gmra.mxu3 %v3561_v32 }
 0x2dd   :  { %v3667_v12 = vpop.f32.mrf.mxu0 }
 0x2e5   :  { %v3671_v44 = vpop.f32.mrf.mxu0 }
 0x2ea   :  { %v3665_v38 = vpop.f32.mrf.mxu1 }
 0x2f2   :  { %v3669_v20 = vpop.f32.mrf.mxu1  ;;  %v1541_v48 = vpop.f32.mrf.mxu2 }
 0x2f3   :  { %v1542_v33 = vadd.f32 %v1541_v48, %v3587_v13 }
 0x2fa   :  { %v1564_v23 = vpop.f32.mrf.mxu1  ;;  %v1544_v59 = vpop.f32.mrf.mxu2 }
 0x2fb   :  { %v1565_v30 = vadd.f32 %v1564_v23, %v1542_v33  ;;  %v1545_v19 = vadd.f32 %v1544_v59, %v3595_v55  ;;  %v3967_v33 = vld [vmem:[#allocation13_spill] sm:$0xff] }
 0x2fd   :  { %v1616_v37 = vmax.f32 %v1565_v30, 0.0  ;;  %v1587_v45 = vpop.f32.mrf.mxu0 }
 0x2fe   :  { %v1588_v22 = vadd.f32 %v1587_v45, %v3587_v13  ;;  %v2000_v45 = vld [vmem:[%s3891_s4] sm:$0xff] }
 0x2ff   :  { %v3674_v63 = vmin.f32 %v1616_v37, 6.0 }
 0x301   :  { %v2615_v18 = vpack.i.bf16 %v3674_v63, %v3965_v29  ;;  %v1755_v9 = vmul.f32 %v3674_v63, %v2906_v46  ;;  %v1635_v51 = vmul.f32 %v3674_v63, %v2931_v57  ;;  %v1846_v37 = vmul.f32 %v3674_v63, %v2853_v16 }
 0x302   :  { %v1610_v40 = vpop.f32.mrf.mxu1  ;;  %v1567_v6 = vpop.f32.mrf.mxu2 }
 0x303   :  { %2616 = vrot.lane.b32.xlu1 %v2615_v18, %s2753_s30  ;;  %v2570_v25 = vpack.i.bf16 %v1755_v9, %v2863_v24  ;;  %v1568_v15 = vadd.f32 %v1567_v6, %v1545_v19  ;;  %v2625_v1 = vpack.i.bf16 %v1635_v51, %v2950_v5  ;;  %v1611_v43 = vadd.f32 %v1610_v40, %v1588_v22  ;;  %v3969_v51 = vld [vmem:[#allocation15_spill] sm:$0xff] }
 0x304   :  { %v1713_v18 = vmul.f32 %v3674_v63, %v2911_v47 }
 0x305   :  { %2571 = vrot.lane.b32.xlu2 %v2570_v25, %s2755_s11  ;;  %v1618_v8 = vmax.f32 %v1568_v15, 0.0  ;;  %v1590_v60 = vpop.f32.mrf.mxu0  ;;  %v1617_v52 = vmax.f32 %v1611_v43, 0.0  ;;  %v3968_v25 = vld [vmem:[#allocation16_spill] sm:$0xff] }
 0x306   :  { %v1591_v21 = vadd.f32 %v1590_v60, %v3595_v55  ;;  %v2605_v9 = vpack.i.bf16 %v1713_v18, %v2896_v41 }
 0x307   :  { %v3686_v53 = vmin.f32 %v1618_v8, 6.0  ;;  %v3714_v42 = vmin.f32 %v1617_v52, 6.0 }
 0x309   :  { %v1758_v17 = vmul.f32 %v3686_v53, %v2906_v46  ;;  %v1716_v55 = vmul.f32 %v3686_v53, %v2911_v47  ;;  %v1927_v46 = vmul.f32 %v3686_v53, %v2944_v0  ;;  %v1849_v28 = vmul.f32 %v3686_v53, %v2853_v16 }
 0x30a   :  { %v1613_v56 = vpop.f32.mrf.mxu1  ;;  %v2575_v27 = vpack.i.bf16 %v3714_v42, %v3674_v63  ;;  %v1807_v23 = vmul.f32 %v3686_v53, %v3967_v33  ;;  %v1847_v59 = vmul.f32 %v3714_v42, %v2869_v26  ;;  %v1804_v16 = vmul.f32 %v3674_v63, %v3967_v33 }
 0x30b   :  { %v1614_v10 = vadd.f32 %v1613_v56, %v1591_v21  ;;  %2626 = vrot.lane.b32.xlu1 %v2625_v1, %s2760_s15  ;;  %v2560_v62 = vpack.i.bf16 %v1758_v17, %v2863_v24  ;;  %v2565_v34 = vpack.i.bf16 %v1716_v55, %v2896_v41  ;;  %v1638_v40 = vmul.f32 %v3686_v53, %v2931_v57  ;;  %v3970_v17 = vld [vmem:[#allocation17_spill] sm:$0xff] }
 0x30c   :  { %v2610_v6 = vpack.i.bf16 %v3686_v53, %v3965_v29  ;;  %v1714_v15 = vmul.f32 %v3714_v42, %v3968_v25  ;;  %v1925_v29 = vmul.f32 %v3714_v42, %v2948_v3  ;;  %v1924_v21 = vmul.f32 %v3674_v63, %v2944_v0  ;;  %v2001_v0 = vld [vmem:[%s3891_s4 + $0x8] sm:$0xff]  ;;  %s2764_s4 = smov [#allocation9]  }
 0x30d   :  { %v1619_v49 = vmax.f32 %v1614_v10, 0.0  ;;  %2561 = vrot.lane.b32.xlu0 %v2560_v62, %s2755_s11  ;;  %v2620_v47 = vpack.i.bf16 %v1638_v40, %v2950_v5  ;;  %v1756_v5 = vmul.f32 %v3714_v42, %v3969_v51  ;;  %v1636_v22 = vmul.f32 %v3714_v42, %v3970_v17  ;;  %v2532_v62 = vpop.permute.xlu2 %2531  ;;  %s2131_s0 = sshll.u32 %s2764_s4, 4  ;;  %s2132_s0 = int_to_ptr.vmem [resolvable:$true] %s2131_s0 }
 0x30e   :  { %v2645_v1 = vpack.i.bf16 %v1925_v29, %v1924_v21  ;;  %v2533_v43 = vunpack.i.l.bf16 %v2532_v62 }
 0x30f   :  { %v3696_v31 = vmin.f32 %v1619_v49, 6.0 }
 0x311   :  { %v2590_v61 = vpack.i.bf16 %v3696_v31, %v3686_v53  ;;  %v1928_v13 = vmul.f32 %v3696_v31, %v2948_v3  ;;  %v1850_v54 = vmul.f32 %v3696_v31, %v2869_v26  ;;  %v1808_v48 = vmul.f32 %v3696_v31, %v3966_v11 }
 0x312   :  { %v1805_v26 = vmul.f32 %v3714_v42, %v3966_v11  ;;  %v1717_v41 = vmul.f32 %v3696_v31, %v3968_v25  ;;  %v1759_v57 = vmul.f32 %v3696_v31, %v3969_v51  ;;  %v2635_v56 = vpack.i.bf16 %v3714_v42, %v3696_v31 }
 0x313   :  { %2591 = vrot.lane.b32.xlu2 %v2590_v61, %s2761_s16  ;;  %v2650_v24 = vpack.i.bf16 %v1928_v13, %v1927_v46  ;;  %v2595_v2 = vpack.i.bf16 %v1850_v54, %v1849_v28  ;;  %v2600_v30 = vpack.i.bf16 %v1808_v48, %v1807_v23  ;;  %v1639_v10 = vmul.f32 %v3696_v31, %v3970_v17 }
 0x314   :  { %v2585_v19 = vpack.i.bf16 %v1805_v26, %v1804_v16  ;;  %v2640_v8 = vpack.i.bf16 %v1714_v15, %v1717_v41  ;;  %v2630_v60 = vpack.i.bf16 %v1756_v5, %v1759_v57  ;;  %v2543_v17 = vunpack.i.l.bf16 %v3635_v58 }
 0x315   :  { %2651 = vrot.lane.b32.xlu1 %v2650_v24, %s2759_s14  ;;  %2566 = vrot.lane.b32.xlu0 %v2565_v34, %s2756_s12  ;;  %v2655_v3 = vpack.i.bf16 %v1636_v22, %v1639_v10 }
 0x31b   :  { %2596 = vrot.lane.b32.xlu2 %v2595_v2, %s2758_s5 }
 0x31d   :  { %2661 = vrot.lane.b32.xlu1 %v3305_v14, %s2759_s14  ;;  %2576 = vrot.lane.b32.xlu0 %v2575_v27, %s2761_s16  ;;  %v2580_v14 = vpack.i.bf16 %v1847_v59, %v1846_v37 }
 0x323   :  { %2601 = vrot.lane.b32.xlu2 %v2600_v30, %s2757_s13 }
 0x325   :  { %2004 = vperm.xlu1 %2303, %v2000_v45   ;;  %2581 = vrot.lane.b32.xlu0 %v2580_v14, %s2758_s5  ;;  %v2534_v14 = vunpack.i.h.bf16 %v2532_v62 }
 0x32b   :  { %2606 = vrot.lane.b32.xlu2 %v2605_v9, %s2756_s12 }
 0x32d   :  { %2586 = vrot.lane.b32.xlu0 %v2585_v19, %s2757_s13 }
 0x333   :  { %2621 = vrot.lane.b32.xlu2 %v2620_v47, %s2760_s15 }
 0x335   :  { %2611 = vrot.lane.b32.xlu0 %v2610_v6, %s2753_s30  ;;  %v2538_v6 = vunpack.i.l.bf16 %v3633_v4 }
 0x33b   :  { %2641 = vrot.lane.b32.xlu2 %v2640_v8, %s2756_s12  ;;  %v2539_v8 = vunpack.i.h.bf16 %v3633_v4 }
 0x33d   :  { %2631 = vrot.lane.b32.xlu0 %v2630_v60, %s2755_s11 }
 0x343   :  { %2646 = vrot.lane.b32.xlu2 %v2645_v1, %s2759_s14 }
 0x345   :  { %2636 = vrot.lane.b32.xlu0 %v2635_v56, %s2753_s30 }
 0x34b   :  { %1003 = vperm.xlu2 %2504, %v2000_v45   ;;  %v3794_v45 = vpop.f32.mrf.mxu3 }
 0x34d   :  { %2656 = vrot.lane.b32.xlu0 %v2655_v3, %s2760_s15 }
 0x353   :  { %2009 = vperm.xlu2 %2504, %v2001_v0   ;;  %v3808_v56 = vpop.f32.mrf.mxu3 }
 0x355   :  { %1008 = vperm.xlu0 %2302, %v2001_v0  }
 0x35f   :  { %v3777_v49 = vpop.permute.xlu2 %2571 }
 0x36d   :  { %v2592_v55 = vpop.permute.xlu2 %2591 }
 0x36e   :  { %v2594_v61 = vunpack.i.h.bf16 %v2592_v55  ;;  %v2593_v46 = vunpack.i.l.bf16 %v2592_v55 }
 0x370   :  { %v1908_v13 = vsel %vm402_vm6, %v2593_v46, %v2594_v61  ;;  %v1909_v24 = vsel %vm402_vm6, %v2594_v61, %v2533_v43 }
 0x371   :  { %2018 = vmatpush.msrb.mxu3 %v1908_v13  ;;  %2064 = vmatpush.msra.mxu1 %v1909_v24  ;;  %v2544_v24 = vunpack.i.h.bf16 %v3635_v58 }
 0x375   :  { %v3781_v52 = vpop.permute.xlu1 %2616  ;;  %v2597_v34 = vpop.permute.xlu2 %2596 }
 0x376   :  { %v2599_v9 = vunpack.i.h.bf16 %v2597_v34  ;;  %v2598_v16 = vunpack.i.l.bf16 %v2597_v34 }
 0x378   :  { %v1872_v15 = vsel %vm176_vm3, %v2598_v16, %v2599_v9  ;;  %v1873_v51 = vsel %vm176_vm3, %v2599_v9, %v2538_v6  ;;  %v2668_v6 = vld [vmem:[#allocation4 + $0x8] sm:$0xff] }
 0x37d   :  { %v2602_v54 = vpop.permute.xlu2 %2601  ;;  %v3783_v28 = vpop.permute.xlu1 %2626 }
 0x37e   :  { %v2604_v60 = vunpack.i.h.bf16 %v2602_v54  ;;  %v2603_v29 = vunpack.i.l.bf16 %v2602_v54 }
 0x37f   :  { %v3785_v2 = vpop.permute.xlu0 %2561 }
 0x380   :  { %v1830_v3 = vsel %vm228_vm2, %v2603_v29, %v2604_v60  ;;  %v1831_v0 = vsel %vm228_vm2, %v2604_v60, %v2543_v17  ;;  %v2564_v58 = vunpack.i.h.bf16 %v3785_v2 }
 0x385   :  { %v3787_v27 = vpop.permute.xlu2 %2606 }
 0x387   :  { %v2652_v11 = vpop.permute.xlu1 %2651  ;;  %v3789_v48 = vpop.permute.xlu0 %2566 }
 0x388   :  { %v2654_v33 = vunpack.i.h.bf16 %v2652_v11  ;;  %v2653_v23 = vunpack.i.l.bf16 %v2652_v11 }
 0x38a   :  { %v1950_v59 = vsel %vm84_vm4, %v2653_v23, %v2654_v33  ;;  %v1080_v23 = vpop.f32.mrf.mxu3 }
 0x38b   :  { %2055 = vmatpush.msrb.mxu2 %v1950_v59  ;;  %v2563_v59 = vunpack.i.l.bf16 %v3785_v2  ;;  %v2667_v2 = vld [vmem:[#allocation4] sm:$0xff] }
 0x38d   :  { %v3792_v30 = vpop.permute.xlu2 %2621 }
 0x38f   :  { %v2662_v37 = vpop.permute.xlu1 %2661  ;;  %v2577_v18 = vpop.permute.xlu0 %2576 }
 0x390   :  { %v2663_v26 = vunpack.i.l.bf16 %v2662_v37  ;;  %v2579_v19 = vunpack.i.h.bf16 %v2577_v18  ;;  %v2578_v40 = vunpack.i.l.bf16 %v2577_v18  ;;  %v2664_v62 = vunpack.i.h.bf16 %v2662_v37 }
 0x392   :  { %v3797_v47 = vsel %vm84_vm4, %v2654_v33, %v2663_v26  ;;  %v1906_v25 = vsel %vm402_vm6, %v2578_v40, %v2579_v19  ;;  %v1907_v41 = vsel %vm402_vm6, %v2579_v19, %v2534_v14  ;;  %v2573_v26 = vunpack.i.l.bf16 %v3777_v49 }
 0x393   :  { %2101 = vmatpush.msrb.mxu0 %v3797_v47  ;;  %2019 = vmatpush.msrb.mxu3 %v1906_v25 }
 0x394   :  { %2065 = vmatpush.msra.mxu1 %v1907_v41 }
 0x395   :  { %v3805_v57 = vpop.permute.xlu2 %2641  ;;  %2020 = vmatpush.msrb.mxu3 %v1872_v15 }
 0x396   :  { %2066 = vmatpush.msra.mxu1 %v1873_v51  ;;  %v2619_v51 = vunpack.i.h.bf16 %v3781_v52 }
 0x397   :  { %v2582_v5 = vpop.permute.xlu0 %2581 }
 0x398   :  { %v2584_v21 = vunpack.i.h.bf16 %v2582_v5  ;;  %v2583_v1 = vunpack.i.l.bf16 %v2582_v5 }
 0x39a   :  { %v1870_v10 = vsel %vm176_vm3, %v2583_v1, %v2584_v21  ;;  %v1871_v22 = vsel %vm176_vm3, %v2584_v21, %v2539_v8  ;;  %v2618_v8 = vunpack.i.l.bf16 %v3781_v52  ;;  %v2623_v1 = vunpack.i.l.bf16 %v3792_v30 }
 0x39b   :  { %2021 = vmatpush.msrb.mxu3 %v1870_v10  ;;  %2067 = vmatpush.msra.mxu1 %v1871_v22 }
 0x39c   :  { %v1694_v52 = vsel %vm150_vm7, %v2618_v8, %v2619_v51 }
 0x39d   :  { %v2647_v4 = vpop.permute.xlu2 %2646  ;;  %2022 = vmatpush.msrb.mxu3 %v1830_v3  ;;  %2068 = vmatpush.msra.mxu1 %v1831_v0  ;;  %v2629_v3 = vunpack.i.h.bf16 %v3783_v28  ;;  %v2628_v0 = vunpack.i.l.bf16 %v3783_v28 }
 0x39e   :  { %v2649_v43 = vunpack.i.h.bf16 %v2647_v4  ;;  %v2648_v55 = vunpack.i.l.bf16 %v2647_v4  ;;  %v2643_v4 = vunpack.i.l.bf16 %v3805_v57 }
 0x39f   :  { %v2587_v61 = vpop.permute.xlu0 %2586 }
 0x3a0   :  { %v1948_v46 = vsel %vm84_vm4, %v2648_v55, %v2649_v43  ;;  %v3817_v13 = vsel %vm84_vm4, %v2649_v43, %v2664_v62  ;;  %v2589_v34 = vunpack.i.h.bf16 %v2587_v61  ;;  %v2588_v54 = vunpack.i.l.bf16 %v2587_v61 }
 0x3a1   :  { %2056 = vmatpush.msrb.mxu2 %v1948_v46  ;;  %2102 = vmatpush.msrb.mxu0 %v3817_v13  ;;  %v1658_v61 = vsel %vm113_vm5, %v2628_v0, %v2629_v3 }
 0x3a2   :  { %2160 = vmatmul.msk.f32.vlgmr.msrb.gmra.mxu2 %vm150_vm7, %v3465_v39  ;;  %2162 = vmatmul.msk.f32.vlgmr.msrb.gmra.mxu0 %vm150_vm7, %v3465_v39  ;;  %v1828_v11 = vsel %vm228_vm2, %v2588_v54, %v2589_v34  ;;  %v1829_v33 = vsel %vm228_vm2, %v2589_v34, %v2544_v24  ;;  %v2574_v39 = vunpack.i.h.bf16 %v3777_v49 }
 0x3a3   :  { %2023 = vmatpush.msrb.mxu3 %v1828_v11  ;;  %2069 = vmatpush.msra.mxu1 %v1829_v33 }
 0x3a5   :  { %v1004_v37 = vpop.permute.xlu2 %1003  ;;  %2024 = vmatpush.msrb.mxu3 %v3686_v53  ;;  %2070 = vmatpush.msra.mxu1 %v3696_v31  ;;  %v2569_v53 = vunpack.i.h.bf16 %v3789_v48  ;;  %v2568_v31 = vunpack.i.l.bf16 %v3789_v48 }
 0x3a6   :  { %v1035_v14 = vadd.f32 %v3665_v38, %v1004_v37  ;;  %v1081_v18 = vadd.f32 %v1080_v23, %v1004_v37  ;;  %v1780_v38 = vsel %vm257_vm1, %v2563_v59, %v2564_v58 }
 0x3a7   :  { %v2612_v19 = vpop.permute.xlu0 %2611  ;;  %2025 = vmatpush.msrb.mxu3 %v3674_v63  ;;  %2071 = vmatpush.msra.mxu1 %v3714_v42  ;;  %v2608_v63 = vunpack.i.l.bf16 %v3787_v27  ;;  %v1778_v42 = vsel %vm257_vm1, %v2573_v26, %v2574_v39  ;;  %v1738_v15 = vsel %vm205_vm0, %v2568_v31, %v2569_v53  ;;  %v1739_v46 = vsel %vm205_vm0, %v2569_v53, %v2643_v4 }
 0x3a8   :  { %v1058_v9 = vadd.f32 %v3794_v45, %v1035_v14  ;;  %v1104_v16 = vadd.f32 %v3667_v12, %v1081_v18  ;;  %v2609_v12 = vunpack.i.h.bf16 %v3787_v27  ;;  %v2614_v48 = vunpack.i.h.bf16 %v2612_v19 }
 0x3a9   :  { %2026 = vmatpush.msrb.mxu3 %v1780_v38  ;;  %v2613_v41 = vunpack.i.l.bf16 %v2612_v19  ;;  %v2624_v27 = vunpack.i.h.bf16 %v3792_v30  ;;  %v2644_v30 = vunpack.i.h.bf16 %v3805_v57  ;;  %v2670_v19 = vld [vmem:[#allocation4 + $0x18] sm:$0xff] }
 0x3aa   :  { %v1109_v40 = vadd.f32 %v2667_v2, %v1058_v9  ;;  %v1110_v25 = vadd.f32 %v2668_v6, %v1104_v16  ;;  %2161 = vmatmul.msk.f32.gmra.mxu2 %vm150_vm7, %v3517_v50  ;;  %v1736_v29 = vsel %vm205_vm0, %v2608_v63, %v2609_v12  ;;  %v2669_v9 = vld [vmem:[#allocation4 + $0x10] sm:$0xff] }
 0x3ab   :  { %2027 = vmatpush.msrb.mxu3 %v1778_v42  ;;  %v1696_v22 = vsel %vm150_vm7, %v2613_v41, %v2614_v48  ;;  %v1660_v43 = vsel %vm113_vm5, %v2623_v1, %v2624_v27  ;;  %v1737_v54 = vsel %vm205_vm0, %v2609_v12, %v2644_v30 }
 0x3ac   :  { %v1113_v49 = vmax.f32 %v1109_v40, 0.0  ;;  %v1114_v45 = vmax.f32 %v1110_v25, 0.0  ;;  %v2005_v40 = vpop.permute.xlu1 %2004 }
 0x3ad   :  { %2028 = vmatpush.msrb.mxu3 %v1738_v15 }
 0x3ae   :  { %v1117_v5 = vmin.f32 %v1113_v49, 6.0  ;;  %v1118_v60 = vmin.f32 %v1114_v45, 6.0 }
 0x3af   :  { %v2632_v21 = vpop.permute.xlu0 %2631  ;;  %2029 = vmatpush.msrb.mxu3 %v1736_v29 }
 0x3b0   :  { %1121 = vst [vmem:[#allocation9] sm:$0xff] %v1117_v5  ;;  %v2634_v17 = vunpack.i.h.bf16 %v2632_v21  ;;  %v2633_v10 = vunpack.i.l.bf16 %v2632_v21  ;;  %v2672_v5 = vld [vmem:[#allocation4 + $0x30] sm:$0xff] }
 0x3b1   :  { %1122 = vst [vmem:[#allocation9 + $0x8] sm:$0xff] %v1118_v60  ;;  %2030 = vmatpush.msrb.mxu3 %v1696_v22 }
 0x3b2   :  { %v1781_v62 = vsel %vm257_vm1, %v2564_v58, %v2633_v10  ;;  %v1779_v55 = vsel %vm257_vm1, %v2574_v39, %v2634_v17 }
 0x3b3   :  { %2031 = vmatpush.msrb.mxu3 %v1694_v52  ;;  %2072 = vmatpush.msra.mxu1 %v1781_v62 }
 0x3b5   :  { %2032 = vmatpush.msrb.mxu3 %v1660_v43  ;;  %2073 = vmatpush.msra.mxu1 %v1779_v55 }
 0x3b7   :  { %v2637_v24 = vpop.permute.xlu0 %2636  ;;  %2033 = vmatpush.msrb.mxu3 %v1658_v61  ;;  %2074 = vmatpush.msra.mxu1 %v1739_v46 }
 0x3b8   :  { %v2639_v28 = vunpack.i.h.bf16 %v2637_v24  ;;  %v2638_v34 = vunpack.i.l.bf16 %v2637_v24  ;;  %2034 = vmatmul.f32.vlgmr.msrb.gmra.mxu3 %v3537_v36 }
 0x3b9   :  { %2166 = vmatpush.msra.mxu3 %v3797_v47  ;;  %2075 = vmatpush.msra.mxu1 %v1737_v54  ;;  %v1083_v47 = vpop.f32.mrf.mxu3 }
 0x3ba   :  { %v1697_v57 = vsel %vm150_vm7, %v2614_v48, %v2638_v34  ;;  %v1695_v11 = vsel %vm150_vm7, %v2619_v51, %v2639_v28 }
 0x3bb   :  { %2167 = vmatpush.msra.mxu3 %v3817_v13  ;;  %2076 = vmatpush.msra.mxu1 %v1697_v57 }
 0x3bd   :  { %2077 = vmatpush.msra.mxu1 %v1695_v11 }
 0x3bf   :  { %v2657_v33 = vpop.permute.xlu0 %2656 }
 0x3c0   :  { %v2659_v23 = vunpack.i.h.bf16 %v2657_v33  ;;  %v2658_v58 = vunpack.i.l.bf16 %v2657_v33  ;;  %2037 = vmatmul.f32.gmra.mxu3 %v3561_v32 }
 0x3c2   :  { %v1661_v59 = vsel %vm113_vm5, %v2624_v27, %v2658_v58  ;;  %v1659_v37 = vsel %vm113_vm5, %v2629_v3, %v2659_v23 }
 0x3c3   :  { %2078 = vmatpush.msra.mxu1 %v1661_v59 }
 0x3c5   :  { %2079 = vmatpush.msra.mxu1 %v1659_v37 }
 0x3c6   :  { %2080 = vmatmul.f32.vlgmr.msra.gmra.mxu1 %v3537_v36 }
 0x3c7   :  { %v1009_v14 = vpop.permute.xlu0 %1008 }
 0x3c8   :  { %v1038_v13 = vadd.f32 %v3669_v20, %v1009_v14  ;;  %v1084_v18 = vadd.f32 %v1083_v47, %v1009_v14  ;;  %2163 = vmatmul.msk.f32.vlgmr.msra.gmra.mxu3 %vm150_vm7, %v3517_v50 }
 0x3ca   :  { %v1061_v39 = vadd.f32 %v3808_v56, %v1038_v13  ;;  %v1107_v26 = vadd.f32 %v3671_v44, %v1084_v18  ;;  %v2671_v56 = vld [vmem:[#allocation4 + $0x20] sm:$0xff]  ;;  %v2010_v44 = vpop.permute.xlu2 %2009 }
 0x3cc   :  { %v1111_v16 = vadd.f32 %v2669_v9, %v1061_v39  ;;  %v1112_v53 = vadd.f32 %v2670_v19, %v1107_v26 }
 0x3ce   :  { %v1115_v31 = vmax.f32 %v1111_v16, 0.0  ;;  %v1116_v38 = vmax.f32 %v1112_v53, 0.0  ;;  %2083 = vmatmul.f32.gmra.mxu1 %v3561_v32 }
 0x3d0   :  { %v1119_v36 = vmin.f32 %v1115_v31, 6.0  ;;  %v1120_v2 = vmin.f32 %v1116_v38, 6.0 }
 0x3d2   :  { %1123 = vst [vmem:[#allocation9 + $0x10] sm:$0xff] %v1119_v36 }
 0x3d3   :  { %1124 = vst [vmem:[#allocation9 + $0x18] sm:$0xff] %v1120_v2 }
 0x41f   :  { %v2104_v49 = vpop.f32.mrf.mxu0 }
 0x425   :  { %v2058_v20 = vpop.f32.mrf.mxu2 }
 0x42d   :  { %v2061_v42 = vpop.f32.mrf.mxu2 }
 0x43b   :  { %v2035_v6 = vpop.f32.mrf.mxu3 }
 0x43c   :  { %v2036_v50 = vadd.f32 %v2035_v6, %v2005_v40 }
 0x43e   :  { %v2059_v25 = vadd.f32 %v2058_v20, %v2036_v50 }
 0x440   :  { %v2110_v12 = vadd.f32 %v2671_v56, %v2059_v25 }
 0x442   :  { %v2114_v63 = vmax.f32 %v2110_v12, 0.0 }
 0x443   :  { %v2038_v45 = vpop.f32.mrf.mxu3  ;;  %v2081_v48 = vpop.f32.mrf.mxu1 }
 0x444   :  { %v2118_v41 = vmin.f32 %v2114_v63, 6.0  ;;  %v2039_v15 = vadd.f32 %v2038_v45, %v2010_v44  ;;  %v2082_v32 = vadd.f32 %v2081_v48, %v2005_v40 }
 0x446   :  { %2123 = vst [vmem:[#allocation9 + $0x20] sm:$0xff] %v2118_v41  ;;  %v2062_v51 = vadd.f32 %v2061_v42, %v2039_v15  ;;  %v2105_v8 = vadd.f32 %v2104_v49, %v2082_v32 }
 0x448   :  { %v2112_v60 = vadd.f32 %v2672_v5, %v2062_v51  ;;  %v2111_v29 = vadd.f32 %v3555_v35, %v2105_v8 }
 0x44a   :  { %v2116_v27 = vmax.f32 %v2112_v60, 0.0  ;;  %v2115_v21 = vmax.f32 %v2111_v29, 0.0 }
 0x44b   :  { %v2084_v1 = vpop.f32.mrf.mxu1  ;;  %v2107_v17 = vpop.f32.mrf.mxu3 }
 0x44c   :  { %v2120_v10 = vmin.f32 %v2116_v27, 6.0  ;;  %v2119_v22 = vmin.f32 %v2115_v21, 6.0  ;;  %v2085_v52 = vadd.f32 %v2084_v1, %v2010_v44 }
 0x44e   :  { %2125 = vst [vmem:[#allocation9 + $0x30] sm:$0xff] %v2120_v10  ;;  %v2108_v3 = vadd.f32 %v2107_v17, %v2085_v52 }
 0x44f   :  { %2124 = vst [vmem:[#allocation9 + $0x28] sm:$0xff] %v2119_v22 }
 0x450   :  { %v2113_v0 = vadd.f32 %v3547_v7, %v2108_v3 }
 0x452   :  { %v2117_v4 = vmax.f32 %v2113_v0, 0.0 }
 0x454   :  { %v2121_v35 = vmin.f32 %v2117_v4, 6.0 }
 0x456   :  { %2126 = vst [vmem:[#allocation9 + $0x38] sm:$0xff] %v2121_v35 }
 0x457   :  { %2139 = dma.vmem_to_hbm [thread:$0]  %s2132_s0, 1024, %s2134_s10, [#allocation6], %s2752_s29, %s2752_s29, %s2753_s30  }
 0x458   :  { %2749 = dma.done.wait [#allocation6], 1024  }
 0x459   :  { %2750 = vsyncadd [#allocation6], 4294966272 }
 0x45a   :  { %2144 = vsyncpa [#allocation5], 1 }
 0x45b   :  { %2145 = vsyncpa [#allocation8], 1 }
 0x45c   :  { %2146 = vsyncpa [#allocation6], 1 }

</bundles_post_ra>
